<compile_context>
chip_gen: v7x
topology: tpu7x:2x2x1
jax: 0.10.0
libtpu: 0.0.40
codegen_flags: <defaults>
</compile_context>

<pallas_src>
import functools

import jax
import jax.numpy as jnp
from jax.experimental import pallas as pl
from jax.experimental.pallas import tpu as pltpu

_LANE = 128
_DEFAULT_ROW_TILE = 256  # used once m is large enough to fill it twice


def _round_up(n: int, m: int) -> int:
    return ((n + m - 1) // m) * m


def _choose_row_tile(m: int, sublane: int) -> int:
    """Adaptive row tile: big for large m, small for small m, and >=2 tiles when
    possible so v7x's second TensorCore isn't idle."""
    m = max(m, 1)
    if m >= 2 * _DEFAULT_ROW_TILE:
        return _DEFAULT_ROW_TILE
    if m > 2 * sublane:
        # aim for two balanced row tiles (megacore sharding on v7x)
        return min(_DEFAULT_ROW_TILE, _round_up((m + 1) // 2, sublane))
    return _round_up(m, sublane)


# --------------------------------------------------------------------------- kernel


def _detr_heads_kernel(*refs, n_bbox_tail, n_gaze_tail, hw_pad, h_pad,
                       approx_sigmoid):
    """Fused DETR heads over one row tile of hs.

    refs = (x, w0_cat, b0_cat,
            bbox_w1, bbox_b1, ..., gaze_w1, gaze_b1, ...,
            o_headwatch, o_bbox, o_gaze)

    w0_cat is the column-concatenation of [head.W | watchout.W | bbox.W0 | gaze.W0]
    (each segment zero-padded to a lane multiple), so a single MXU pass computes all
    four heads' first layer from the shared x tile. Matmuls run in the operand dtype
    with f32 accumulation; bias/ReLU/sigmoid stay in f32 on the VPU/EUP.
    """
    x_ref, w0_ref, b0_ref = refs[0], refs[1], refs[2]
    idx = 3
    bbox_wb = refs[idx: idx + 2 * n_bbox_tail]
    idx += 2 * n_bbox_tail
    gaze_wb = refs[idx: idx + 2 * n_gaze_tail]
    idx += 2 * n_gaze_tail
    o_hw_ref, o_bbox_ref, o_gaze_ref = refs[idx], refs[idx + 1], refs[idx + 2]

    x = x_ref[...]

    # One wide MXU pass for all layer-0 work (shared LHS, concatenated RHS).
    acc0 = jnp.dot(x, w0_ref[...], preferred_element_type=jnp.float32)
    acc0 = acc0 + b0_ref[...].astype(jnp.float32)

    # head + watchout are single linear layers (no activation): store their slab.
    o_hw_ref[...] = acc0[:, :hw_pad].astype(o_hw_ref.dtype)

    def tail(h0, wb, o_ref):
        acc = h0
        n = len(wb) // 2
        for i in range(n):
            w_ref, b_ref = wb[2 * i], wb[2 * i + 1]
            acc = jnp.dot(acc.astype(w_ref.dtype), w_ref[...],
                          preferred_element_type=jnp.float32)
            acc = acc + b_ref[...].astype(jnp.float32)
            if i < n - 1:
                acc = jnp.maximum(acc, 0.0)
        # sigmoid epilogue: exp on the EUP; approx reciprocal also rides the EUP slot
        e = jnp.exp(-acc)
        if approx_sigmoid:
            acc = pl.reciprocal(1.0 + e, approx=True)
        else:
            acc = 1.0 / (1.0 + e)
        o_ref[...] = acc.astype(o_ref.dtype)

    # ReLU of the bbox / gaze layer-0 segments (lane-aligned slices of acc0).
    h_bbox = jnp.maximum(acc0[:, hw_pad:hw_pad + h_pad], 0.0)
    h_gaze = jnp.maximum(acc0[:, hw_pad + h_pad:hw_pad + 2 * h_pad], 0.0)
    tail(h_bbox, bbox_wb, o_bbox_ref)
    tail(h_gaze, gaze_wb, o_gaze_ref)


# ---------------------------------------------------------------- param preparation


def prepare_detr_heads(params, *, compute_dtype=jnp.bfloat16, approx_sigmoid=True):
    """One-time padding / concatenation of the four heads' parameters.

    params: dict with keys "head", "watchout" (1-layer MLPs), "bbox_embed",
    "gaze_map" (>=2-layer MLPs); each a list of (W (in,out), b (out,)).
    Padding is hoisted here so the per-forward path only pads hs.
    """
    head, watch = params["head"], params["watchout"]
    bbox, gaze = params["bbox_embed"], params["gaze_map"]
    assert len(head) == 1 and len(watch) == 1, "head/watchout must be 1-layer MLPs"
    assert len(bbox) >= 2 and len(gaze) >= 2, "bbox/gaze must have >=2 layers"

    in_dim = head[0][0].shape[0]
    hidden = bbox[0][0].shape[1]
    assert watch[0][0].shape[0] == in_dim
    assert bbox[0][0].shape == (in_dim, hidden)
    assert gaze[0][0].shape == (in_dim, hidden)

    in_pad = _round_up(in_dim, _LANE)
    h_pad = _round_up(hidden, _LANE)
    head_dim = head[0][0].shape[1]
    watch_dim = watch[0][0].shape[1]
    hw_pad = _round_up(head_dim + watch_dim, _LANE)

    w0_width = hw_pad + 2 * h_pad
    w0 = jnp.zeros((in_pad, w0_width), compute_dtype)
    b0 = jnp.zeros((1, w0_width), jnp.float32)
    # head -> cols [0, head_dim)
    w0 = w0.at[:in_dim, :head_dim].set(head[0][0].astype(compute_dtype))
    b0 = b0.at[0, :head_dim].set(head[0][1].astype(jnp.float32))
    # watchout -> cols [head_dim, head_dim + watch_dim)
    w0 = w0.at[:in_dim, head_dim:head_dim + watch_dim].set(
        watch[0][0].astype(compute_dtype))
    b0 = b0.at[0, head_dim:head_dim + watch_dim].set(
        watch[0][1].astype(jnp.float32))
    # bbox layer 0 -> cols [hw_pad, hw_pad + hidden)
    w0 = w0.at[:in_dim, hw_pad:hw_pad + hidden].set(bbox[0][0].astype(compute_dtype))
    b0 = b0.at[0, hw_pad:hw_pad + hidden].set(bbox[0][1].astype(jnp.float32))
    # gaze layer 0 -> cols [hw_pad + h_pad, hw_pad + h_pad + hidden)
    w0 = w0.at[:in_dim, hw_pad + h_pad:hw_pad + h_pad + hidden].set(
        gaze[0][0].astype(compute_dtype))
    b0 = b0.at[0, hw_pad + h_pad:hw_pad + h_pad + hidden].set(
        gaze[0][1].astype(jnp.float32))

    def pad_tail(layers):
        out = []
        prev = h_pad
        for (w, b) in layers:
            n, k = w.shape
            n_p, k_p = _round_up(n, _LANE), _round_up(k, _LANE)
            assert n_p == prev, "consecutive layer dims must chain"
            w_p = jnp.zeros((n_p, k_p), compute_dtype).at[:n, :k].set(
                w.astype(compute_dtype))
            b_p = jnp.zeros((1, k_p), jnp.float32).at[0, :k].set(
                b.astype(jnp.float32))
            out.append((w_p, b_p))
            prev = k_p
        return out, prev

    bbox_tail, bbox_out_pad = pad_tail(bbox[1:])
    gaze_tail, gaze_out_pad = pad_tail(gaze[1:])

    return {
        "w0": w0, "b0": b0,
        "bbox_tail": bbox_tail, "gaze_tail": gaze_tail,
        "meta": dict(
            in_dim=in_dim, in_pad=in_pad, h_pad=h_pad, hw_pad=hw_pad,
            head_dim=head_dim, watch_dim=watch_dim,
            bbox_dim=bbox[-1][0].shape[1], gaze_dim=gaze[-1][0].shape[1],
            bbox_out_pad=bbox_out_pad, gaze_out_pad=gaze_out_pad,
            compute_dtype=compute_dtype, approx_sigmoid=approx_sigmoid,
        ),
    }


# ------------------------------------------------------------------------- forward


def detr_heads_forward(hs, prep):
    """DETR prediction heads on the decoder output hs: (batch, num_queries, hidden).

    Matches DETR.forward's head section:
      pred_head = head(hs); pred_boxes = bbox_embed(hs).sigmoid();
      pred_watchout = watchout(hs); pred_heatmap = gaze_map(hs).sigmoid().
    One fused pallas_call computes all four heads.
    """
    meta = prep["meta"]
    cdt = meta["compute_dtype"]
    out_dtype = hs.dtype
    lead = hs.shape[:-1]
    in_dim = hs.shape[-1]
    assert in_dim == meta["in_dim"]

    x2d = hs.reshape(-1, in_dim)
    m = x2d.shape[0]
    sublane = max(8, 32 // jnp.dtype(cdt).itemsize)   # 8 for f32, 16 for bf16
    row_tile = _choose_row_tile(m, sublane)
    m_pad = _round_up(max(m, 1), row_tile)
    in_pad = meta["in_pad"]

    if m_pad == m and in_pad == in_dim and x2d.dtype == jnp.dtype(cdt):
        x_p = x2d
    else:
        x_p = jnp.zeros((m_pad, in_pad), cdt).at[:m, :in_dim].set(x2d.astype(cdt))

    operands = [x_p, prep["w0"], prep["b0"]]
    in_specs = [
        pl.BlockSpec((row_tile, in_pad), lambda i: (i, 0)),
        pl.BlockSpec(prep["w0"].shape, lambda i: (0, 0)),   # grid-invariant: resident
        pl.BlockSpec(prep["b0"].shape, lambda i: (0, 0)),
    ]
    for (w_p, b_p) in prep["bbox_tail"] + prep["gaze_tail"]:
        operands += [w_p, b_p]
        in_specs += [pl.BlockSpec(w_p.shape, lambda i: (0, 0)),
                     pl.BlockSpec(b_p.shape, lambda i: (0, 0))]

    hw_pad = meta["hw_pad"]
    bbox_out_pad = meta["bbox_out_pad"]
    gaze_out_pad = meta["gaze_out_pad"]

    out_shape = (
        jax.ShapeDtypeStruct((m_pad, hw_pad), out_dtype),
        jax.ShapeDtypeStruct((m_pad, bbox_out_pad), out_dtype),
        jax.ShapeDtypeStruct((m_pad, gaze_out_pad), out_dtype),
    )
    out_specs = (
        pl.BlockSpec((row_tile, hw_pad), lambda i: (i, 0)),
        pl.BlockSpec((row_tile, bbox_out_pad), lambda i: (i, 0)),
        pl.BlockSpec((row_tile, gaze_out_pad), lambda i: (i, 0)),
    )

    # Advisory cost estimate.
    flops = 2 * m_pad * in_pad * prep["w0"].shape[1]
    for (w_p, _) in prep["bbox_tail"] + prep["gaze_tail"]:
        flops += 2 * m_pad * w_p.shape[0] * w_p.shape[1]
    bytes_accessed = sum(int(a.size) * a.dtype.itemsize for a in operands)
    bytes_accessed += m_pad * (hw_pad + bbox_out_pad + gaze_out_pad) * \
        jnp.dtype(out_dtype).itemsize
    transcendentals = m_pad * (bbox_out_pad + gaze_out_pad)

    # Generous explicit VMEM bound: all heads' weights resident + double-buffered
    # row/output tiles + activation working set.
    weight_bytes = sum(int(a.size) * a.dtype.itemsize for a in operands[1:])
    tile_bytes = row_tile * (
        in_pad * jnp.dtype(cdt).itemsize
        + (hw_pad + bbox_out_pad + gaze_out_pad) * jnp.dtype(out_dtype).itemsize
        + (prep["w0"].shape[1] + meta["h_pad"]) * 4)
    vmem_limit = int(min(100 * 1024 * 1024,
                         max(4 * (2 * weight_bytes + 4 * tile_bytes),
                             16 * 1024 * 1024)))

    kernel = functools.partial(
        _detr_heads_kernel,
        n_bbox_tail=len(prep["bbox_tail"]),
        n_gaze_tail=len(prep["gaze_tail"]),
        hw_pad=hw_pad,
        h_pad=meta["h_pad"],
        approx_sigmoid=meta["approx_sigmoid"],
    )

    o_hw, o_bbox, o_gaze = pl.pallas_call(
        kernel,
        out_shape=out_shape,
        grid_spec=pltpu.PrefetchScalarGridSpec(
            num_scalar_prefetch=0,
            grid=(m_pad // row_tile,),
            in_specs=in_specs,
            out_specs=out_specs,
        ),
        compiler_params=pltpu.CompilerParams(
            dimension_semantics=("parallel",),   # row tiles shard across TCs (v7x)
            vmem_limit_bytes=vmem_limit,
        ),
        cost_estimate=pl.CostEstimate(flops=flops,
                                      transcendentals=transcendentals,
                                      bytes_accessed=bytes_accessed),
    )(*operands)

    head_dim, watch_dim = meta["head_dim"], meta["watch_dim"]
    return {
        "pred_head": o_hw[:m, :head_dim].reshape(*lead, head_dim),
        "pred_boxes": o_bbox[:m, :meta["bbox_dim"]].reshape(*lead, meta["bbox_dim"]),
        "pred_watchout": o_hw[:m, head_dim:head_dim + watch_dim].reshape(
            *lead, watch_dim),
        "pred_heatmap": o_gaze[:m, :meta["gaze_dim"]].reshape(*lead, meta["gaze_dim"]),
    }


# ----------------------------------------------------------------- init / reference


def init_mlp_params(key, input_dim, hidden_dim, output_dim, num_layers,
                    dtype=jnp.float32):
    """nn.Linear default init U(-1/sqrt(fan_in), 1/sqrt(fan_in)); W stored (in,out)."""
    h = [hidden_dim] * (num_layers - 1)
    dims = list(zip([input_dim] + h, h + [output_dim]))
    params = []
    for (n, k) in dims:
        key, wk, bk = jax.random.split(key, 3)
        bound = 1.0 / float(n) ** 0.5
        w = jax.random.uniform(wk, (n, k), dtype, minval=-bound, maxval=bound)
        b = jax.random.uniform(bk, (k,), dtype, minval=-bound, maxval=bound)
        params.append((w, b))
    return params


def mlp_reference(x, params, apply_sigmoid=False):
    num_layers = len(params)
    for i, (w, b) in enumerate(params):
        x = x @ w + b
        if i < num_layers - 1:
            x = jnp.maximum(x, 0.0)
    if apply_sigmoid:
        x = jax.nn.sigmoid(x)
    return x


# --------------------------------------------------------------------------- main


if __name__ == "__main__":
    key = jax.random.PRNGKey(0)
    k_hs, k_b, k_g, k_h, k_w = jax.random.split(key, 5)

    # Small DETR-like setup: hs = decoder output (batch, num_queries, hidden_dim)
    batch, num_queries, hidden_dim = 2, 8, 32
    heat_map = (6, 6)
    map_size = heat_map[0] * heat_map[1]

    hs = jax.random.normal(k_hs, (batch, num_queries, hidden_dim), jnp.float32)
    params = {
        "bbox_embed": init_mlp_params(k_b, hidden_dim, hidden_dim, 4, 3),
        "gaze_map":   init_mlp_params(k_g, hidden_dim, hidden_dim, map_size, 5),
        "head":       init_mlp_params(k_h, hidden_dim, hidden_dim, 2, 1),
        "watchout":   init_mlp_params(k_w, hidden_dim, hidden_dim, 2, 1),
    }

    ref = {
        "pred_head":     mlp_reference(hs, params["head"]),
        "pred_boxes":    mlp_reference(hs, params["bbox_embed"], apply_sigmoid=True),
        "pred_watchout": mlp_reference(hs, params["watchout"]),
        "pred_heatmap":  mlp_reference(hs, params["gaze_map"], apply_sigmoid=True),
    }

    # 1) Exactness path: f32 MXU operands + exact sigmoid — tight tolerance.
    prep_f32 = prepare_detr_heads(params, compute_dtype=jnp.float32,
                                  approx_sigmoid=False)
    out_f32 = jax.block_until_ready(detr_heads_forward(hs, prep_f32))
    assert out_f32["pred_head"].shape == (batch, num_queries, 2)
    assert out_f32["pred_boxes"].shape == (batch, num_queries, 4)
    assert out_f32["pred_watchout"].shape == (batch, num_queries, 2)
    assert out_f32["pred_heatmap"].shape == (batch, num_queries, map_size)
    for name in ref:
        assert jnp.allclose(out_f32[name], ref[name], atol=1e-5, rtol=1e-5), name

    # 2) Default fast path: bf16 MXU operands (f32 accumulation) + EUP approx sigmoid,
    #    parameters pre-padded once, whole forward jitted — loose tolerance.
    prep = prepare_detr_heads(params)  # bf16 + approx sigmoid by default
    fwd = jax.jit(lambda x: detr_heads_forward(x, prep))
    out = jax.block_until_ready(fwd(hs))
    for name in ref:
        assert out[name].shape == ref[name].shape, name
        assert jnp.allclose(out[name].astype(jnp.float32), ref[name],
                            atol=5e-2, rtol=5e-2), name

    print("KERNEL_OK")
</pallas_src>

<mosaic_0001>
module attributes {stable_mosaic.version = 11 : i64} {
  func.func @_detr_heads_kernel(%arg0: i32, %arg1: memref<16x128xf32, #tpu.memory_space<vmem>>, %arg2: memref<128x384xf32, #tpu.memory_space<vmem>>, %arg3: memref<1x384xf32, #tpu.memory_space<vmem>>, %arg4: memref<128x128xf32, #tpu.memory_space<vmem>>, %arg5: memref<1x128xf32, #tpu.memory_space<vmem>>, %arg6: memref<128x128xf32, #tpu.memory_space<vmem>>, %arg7: memref<1x128xf32, #tpu.memory_space<vmem>>, %arg8: memref<128x128xf32, #tpu.memory_space<vmem>>, %arg9: memref<1x128xf32, #tpu.memory_space<vmem>>, %arg10: memref<128x128xf32, #tpu.memory_space<vmem>>, %arg11: memref<1x128xf32, #tpu.memory_space<vmem>>, %arg12: memref<128x128xf32, #tpu.memory_space<vmem>>, %arg13: memref<1x128xf32, #tpu.memory_space<vmem>>, %arg14: memref<128x128xf32, #tpu.memory_space<vmem>>, %arg15: memref<1x128xf32, #tpu.memory_space<vmem>>, %arg16: memref<16x128xf32, #tpu.memory_space<vmem>>, %arg17: memref<16x128xf32, #tpu.memory_space<vmem>>, %arg18: memref<16x128xf32, #tpu.memory_space<vmem>>) attributes {dimension_semantics = [#tpu.dimension_semantics<parallel>], iteration_bounds = array<i64: 1>, scalar_prefetch = 0 : i64, scratch_operands = 0 : i64, tpu.core_type = #tpu.core_type<tc>, window_params = [{transform_indices = @transform_0, window_bounds = array<i64: 16, 128>}, {pipeline_mode = #tpu.pipeline_mode<synchronous>, transform_indices = @transform_1, window_bounds = array<i64: 128, 384>}, {pipeline_mode = #tpu.pipeline_mode<synchronous>, transform_indices = @transform_2, window_bounds = array<i64: 1, 384>}, {pipeline_mode = #tpu.pipeline_mode<synchronous>, transform_indices = @transform_3, window_bounds = array<i64: 128, 128>}, {pipeline_mode = #tpu.pipeline_mode<synchronous>, transform_indices = @transform_4, window_bounds = array<i64: 1, 128>}, {pipeline_mode = #tpu.pipeline_mode<synchronous>, transform_indices = @transform_5, window_bounds = array<i64: 128, 128>}, {pipeline_mode = #tpu.pipeline_mode<synchronous>, transform_indices = @transform_6, window_bounds = array<i64: 1, 128>}, {pipeline_mode = #tpu.pipeline_mode<synchronous>, transform_indices = @transform_7, window_bounds = array<i64: 128, 128>}, {pipeline_mode = #tpu.pipeline_mode<synchronous>, transform_indices = @transform_8, window_bounds = array<i64: 1, 128>}, {pipeline_mode = #tpu.pipeline_mode<synchronous>, transform_indices = @transform_9, window_bounds = array<i64: 128, 128>}, {pipeline_mode = #tpu.pipeline_mode<synchronous>, transform_indices = @transform_10, window_bounds = array<i64: 1, 128>}, {pipeline_mode = #tpu.pipeline_mode<synchronous>, transform_indices = @transform_11, window_bounds = array<i64: 128, 128>}, {pipeline_mode = #tpu.pipeline_mode<synchronous>, transform_indices = @transform_12, window_bounds = array<i64: 1, 128>}, {pipeline_mode = #tpu.pipeline_mode<synchronous>, transform_indices = @transform_13, window_bounds = array<i64: 128, 128>}, {pipeline_mode = #tpu.pipeline_mode<synchronous>, transform_indices = @transform_14, window_bounds = array<i64: 1, 128>}, {transform_indices = @transform_15, window_bounds = array<i64: 16, 128>}, {transform_indices = @transform_16, window_bounds = array<i64: 16, 128>}, {transform_indices = @transform_17, window_bounds = array<i64: 16, 128>}]} {
    %c0 = arith.constant 0 : index
    %c0_0 = arith.constant 0 : index
    %0 = vector.load %arg1[%c0, %c0_0] : memref<16x128xf32, #tpu.memory_space<vmem>>, vector<16x128xf32>
    %c0_1 = arith.constant 0 : index
    %c0_2 = arith.constant 0 : index
    %1 = vector.load %arg2[%c0_1, %c0_2] : memref<128x384xf32, #tpu.memory_space<vmem>>, vector<128x384xf32>
    %cst = arith.constant dense<0.000000e+00> : vector<16x384xf32>
    %2 = tpu.matmul %0, %1, %cst {dimension_numbers = #tpu.dot_dimension_numbers<[1], [0], [0], [1], [0, 0, 1, 1], [], []>} : vector<16x128xf32>, vector<128x384xf32>, vector<16x384xf32> -> vector<16x384xf32>
    %c0_3 = arith.constant 0 : index
    %c0_4 = arith.constant 0 : index
    %3 = vector.load %arg3[%c0_3, %c0_4] : memref<1x384xf32, #tpu.memory_space<vmem>>, vector<1x384xf32>
    %4 = vector.broadcast %3 : vector<1x384xf32> to vector<16x384xf32>
    %5 = arith.addf %2, %4 : vector<16x384xf32>
    %6 = vector.extract_strided_slice %5 {offsets = [0, 0], sizes = [16, 128], strides = [1, 1]} : vector<16x384xf32> to vector<16x128xf32>
    %c0_5 = arith.constant 0 : index
    %c0_6 = arith.constant 0 : index
    %7 = vector.load %arg16[%c0_5, %c0_6] : memref<16x128xf32, #tpu.memory_space<vmem>>, vector<16x128xf32>
    tpu.vector_store %arg16[%c0_5, %c0_6], %6 {strides = array<i32>} : memref<16x128xf32, #tpu.memory_space<vmem>>, vector<16x128xf32>,
    %8 = vector.extract_strided_slice %5 {offsets = [0, 128], sizes = [16, 128], strides = [1, 1]} : vector<16x384xf32> to vector<16x128xf32>
    %cst_7 = arith.constant 0.000000e+00 : f32
    %9 = vector.broadcast %cst_7 : f32 to vector<16x128xf32>
    %10 = arith.maximumf %8, %9 : vector<16x128xf32>
    %11 = vector.extract_strided_slice %5 {offsets = [0, 256], sizes = [16, 128], strides = [1, 1]} : vector<16x384xf32> to vector<16x128xf32>
    %cst_8 = arith.constant 0.000000e+00 : f32
    %12 = vector.broadcast %cst_8 : f32 to vector<16x128xf32>
    %13 = arith.maximumf %11, %12 : vector<16x128xf32>
    %c0_9 = arith.constant 0 : index
    %c0_10 = arith.constant 0 : index
    %14 = vector.load %arg4[%c0_9, %c0_10] : memref<128x128xf32, #tpu.memory_space<vmem>>, vector<128x128xf32>
    %cst_11 = arith.constant dense<0.000000e+00> : vector<16x128xf32>
    %15 = tpu.matmul %10, %14, %cst_11 {dimension_numbers = #tpu.dot_dimension_numbers<[1], [0], [0], [1], [0, 0, 1, 1], [], []>} : vector<16x128xf32>, vector<128x128xf32>, vector<16x128xf32> -> vector<16x128xf32>
    %c0_12 = arith.constant 0 : index
    %c0_13 = arith.constant 0 : index
    %16 = vector.load %arg5[%c0_12, %c0_13] : memref<1x128xf32, #tpu.memory_space<vmem>>, vector<1x128xf32>
    %17 = vector.broadcast %16 : vector<1x128xf32> to vector<16x128xf32>
    %18 = arith.addf %15, %17 : vector<16x128xf32>
    %cst_14 = arith.constant 0.000000e+00 : f32
    %19 = vector.broadcast %cst_14 : f32 to vector<16x128xf32>
    %20 = arith.maximumf %18, %19 : vector<16x128xf32>
    %c0_15 = arith.constant 0 : index
    %c0_16 = arith.constant 0 : index
    %21 = vector.load %arg6[%c0_15, %c0_16] : memref<128x128xf32, #tpu.memory_space<vmem>>, vector<128x128xf32>
    %cst_17 = arith.constant dense<0.000000e+00> : vector<16x128xf32>
    %22 = tpu.matmul %20, %21, %cst_17 {dimension_numbers = #tpu.dot_dimension_numbers<[1], [0], [0], [1], [0, 0, 1, 1], [], []>} : vector<16x128xf32>, vector<128x128xf32>, vector<16x128xf32> -> vector<16x128xf32>
    %c0_18 = arith.constant 0 : index
    %c0_19 = arith.constant 0 : index
    %23 = vector.load %arg7[%c0_18, %c0_19] : memref<1x128xf32, #tpu.memory_space<vmem>>, vector<1x128xf32>
    %24 = vector.broadcast %23 : vector<1x128xf32> to vector<16x128xf32>
    %25 = arith.addf %22, %24 : vector<16x128xf32>
    %cst_20 = arith.constant 0.000000e+00 : f32
    %26 = vector.broadcast %cst_20 : f32 to vector<16x128xf32>
    %27 = arith.subf %26, %25 : vector<16x128xf32>
    %28 = math.exp %27 : vector<16x128xf32>
    %cst_21 = arith.constant 1.000000e+00 : f32
    %29 = vector.broadcast %cst_21 : f32 to vector<16x128xf32>
    %30 = arith.addf %29, %28 : vector<16x128xf32>
    %cst_22 = arith.constant 1.000000e+00 : f32
    %31 = vector.broadcast %cst_22 : f32 to vector<16x128xf32>
    %32 = arith.divf %31, %30 : vector<16x128xf32>
    %c0_23 = arith.constant 0 : index
    %c0_24 = arith.constant 0 : index
    %33 = vector.load %arg17[%c0_23, %c0_24] : memref<16x128xf32, #tpu.memory_space<vmem>>, vector<16x128xf32>
    tpu.vector_store %arg17[%c0_23, %c0_24], %32 {strides = array<i32>} : memref<16x128xf32, #tpu.memory_space<vmem>>, vector<16x128xf32>,
    %c0_25 = arith.constant 0 : index
    %c0_26 = arith.constant 0 : index
    %34 = vector.load %arg8[%c0_25, %c0_26] : memref<128x128xf32, #tpu.memory_space<vmem>>, vector<128x128xf32>
    %cst_27 = arith.constant dense<0.000000e+00> : vector<16x128xf32>
    %35 = tpu.matmul %13, %34, %cst_27 {dimension_numbers = #tpu.dot_dimension_numbers<[1], [0], [0], [1], [0, 0, 1, 1], [], []>} : vector<16x128xf32>, vector<128x128xf32>, vector<16x128xf32> -> vector<16x128xf32>
    %c0_28 = arith.constant 0 : index
    %c0_29 = arith.constant 0 : index
    %36 = vector.load %arg9[%c0_28, %c0_29] : memref<1x128xf32, #tpu.memory_space<vmem>>, vector<1x128xf32>
    %37 = vector.broadcast %36 : vector<1x128xf32> to vector<16x128xf32>
    %38 = arith.addf %35, %37 : vector<16x128xf32>
    %cst_30 = arith.constant 0.000000e+00 : f32
    %39 = vector.broadcast %cst_30 : f32 to vector<16x128xf32>
    %40 = arith.maximumf %38, %39 : vector<16x128xf32>
    %c0_31 = arith.constant 0 : index
    %c0_32 = arith.constant 0 : index
    %41 = vector.load %arg10[%c0_31, %c0_32] : memref<128x128xf32, #tpu.memory_space<vmem>>, vector<128x128xf32>
    %cst_33 = arith.constant dense<0.000000e+00> : vector<16x128xf32>
    %42 = tpu.matmul %40, %41, %cst_33 {dimension_numbers = #tpu.dot_dimension_numbers<[1], [0], [0], [1], [0, 0, 1, 1], [], []>} : vector<16x128xf32>, vector<128x128xf32>, vector<16x128xf32> -> vector<16x128xf32>
    %c0_34 = arith.constant 0 : index
    %c0_35 = arith.constant 0 : index
    %43 = vector.load %arg11[%c0_34, %c0_35] : memref<1x128xf32, #tpu.memory_space<vmem>>, vector<1x128xf32>
    %44 = vector.broadcast %43 : vector<1x128xf32> to vector<16x128xf32>
    %45 = arith.addf %42, %44 : vector<16x128xf32>
    %cst_36 = arith.constant 0.000000e+00 : f32
    %46 = vector.broadcast %cst_36 : f32 to vector<16x128xf32>
    %47 = arith.maximumf %45, %46 : vector<16x128xf32>
    %c0_37 = arith.constant 0 : index
    %c0_38 = arith.constant 0 : index
    %48 = vector.load %arg12[%c0_37, %c0_38] : memref<128x128xf32, #tpu.memory_space<vmem>>, vector<128x128xf32>
    %cst_39 = arith.constant dense<0.000000e+00> : vector<16x128xf32>
    %49 = tpu.matmul %47, %48, %cst_39 {dimension_numbers = #tpu.dot_dimension_numbers<[1], [0], [0], [1], [0, 0, 1, 1], [], []>} : vector<16x128xf32>, vector<128x128xf32>, vector<16x128xf32> -> vector<16x128xf32>
    %c0_40 = arith.constant 0 : index
    %c0_41 = arith.constant 0 : index
    %50 = vector.load %arg13[%c0_40, %c0_41] : memref<1x128xf32, #tpu.memory_space<vmem>>, vector<1x128xf32>
    %51 = vector.broadcast %50 : vector<1x128xf32> to vector<16x128xf32>
    %52 = arith.addf %49, %51 : vector<16x128xf32>
    %cst_42 = arith.constant 0.000000e+00 : f32
    %53 = vector.broadcast %cst_42 : f32 to vector<16x128xf32>
    %54 = arith.maximumf %52, %53 : vector<16x128xf32>
    %c0_43 = arith.constant 0 : index
    %c0_44 = arith.constant 0 : index
    %55 = vector.load %arg14[%c0_43, %c0_44] : memref<128x128xf32, #tpu.memory_space<vmem>>, vector<128x128xf32>
    %cst_45 = arith.constant dense<0.000000e+00> : vector<16x128xf32>
    %56 = tpu.matmul %54, %55, %cst_45 {dimension_numbers = #tpu.dot_dimension_numbers<[1], [0], [0], [1], [0, 0, 1, 1], [], []>} : vector<16x128xf32>, vector<128x128xf32>, vector<16x128xf32> -> vector<16x128xf32>
    %c0_46 = arith.constant 0 : index
    %c0_47 = arith.constant 0 : index
    %57 = vector.load %arg15[%c0_46, %c0_47] : memref<1x128xf32, #tpu.memory_space<vmem>>, vector<1x128xf32>
    %58 = vector.broadcast %57 : vector<1x128xf32> to vector<16x128xf32>
    %59 = arith.addf %56, %58 : vector<16x128xf32>
    %cst_48 = arith.constant 0.000000e+00 : f32
    %60 = vector.broadcast %cst_48 : f32 to vector<16x128xf32>
    %61 = arith.subf %60, %59 : vector<16x128xf32>
    %62 = math.exp %61 : vector<16x128xf32>
    %cst_49 = arith.constant 1.000000e+00 : f32
    %63 = vector.broadcast %cst_49 : f32 to vector<16x128xf32>
    %64 = arith.addf %63, %62 : vector<16x128xf32>
    %cst_50 = arith.constant 1.000000e+00 : f32
    %65 = vector.broadcast %cst_50 : f32 to vector<16x128xf32>
    %66 = arith.divf %65, %64 : vector<16x128xf32>
    %c0_51 = arith.constant 0 : index
    %c0_52 = arith.constant 0 : index
    %67 = vector.load %arg18[%c0_51, %c0_52] : memref<16x128xf32, #tpu.memory_space<vmem>>, vector<16x128xf32>
    tpu.vector_store %arg18[%c0_51, %c0_52], %66 {strides = array<i32>} : memref<16x128xf32, #tpu.memory_space<vmem>>, vector<16x128xf32>,
    return
  }
  func.func @transform_0(%arg0: i32) -> (i32, i32) {
    %c0_i32 = arith.constant 0 : i32
    %c0_i32_0 = arith.constant 0 : i32
    return %arg0, %c0_i32 : i32, i32
  }
  func.func @transform_1(%arg0: i32) -> (i32, i32) {
    %c0_i32 = arith.constant 0 : i32
    %c0_i32_0 = arith.constant 0 : i32
    %c0_i32_1 = arith.constant 0 : i32
    return %c0_i32, %c0_i32_0 : i32, i32
  }
  func.func @transform_2(%arg0: i32) -> (i32, i32) {
    %c0_i32 = arith.constant 0 : i32
    %c0_i32_0 = arith.constant 0 : i32
    %c0_i32_1 = arith.constant 0 : i32
    return %c0_i32, %c0_i32_0 : i32, i32
  }
  func.func @transform_3(%arg0: i32) -> (i32, i32) {
    %c0_i32 = arith.constant 0 : i32
    %c0_i32_0 = arith.constant 0 : i32
    %c0_i32_1 = arith.constant 0 : i32
    return %c0_i32, %c0_i32_0 : i32, i32
  }
  func.func @transform_4(%arg0: i32) -> (i32, i32) {
    %c0_i32 = arith.constant 0 : i32
    %c0_i32_0 = arith.constant 0 : i32
    %c0_i32_1 = arith.constant 0 : i32
    return %c0_i32, %c0_i32_0 : i32, i32
  }
  func.func @transform_5(%arg0: i32) -> (i32, i32) {
    %c0_i32 = arith.constant 0 : i32
    %c0_i32_0 = arith.constant 0 : i32
    %c0_i32_1 = arith.constant 0 : i32
    return %c0_i32, %c0_i32_0 : i32, i32
  }
  func.func @transform_6(%arg0: i32) -> (i32, i32) {
    %c0_i32 = arith.constant 0 : i32
    %c0_i32_0 = arith.constant 0 : i32
    %c0_i32_1 = arith.constant 0 : i32
    return %c0_i32, %c0_i32_0 : i32, i32
  }
  func.func @transform_7(%arg0: i32) -> (i32, i32) {
    %c0_i32 = arith.constant 0 : i32
    %c0_i32_0 = arith.constant 0 : i32
    %c0_i32_1 = arith.constant 0 : i32
    return %c0_i32, %c0_i32_0 : i32, i32
  }
  func.func @transform_8(%arg0: i32) -> (i32, i32) {
    %c0_i32 = arith.constant 0 : i32
    %c0_i32_0 = arith.constant 0 : i32
    %c0_i32_1 = arith.constant 0 : i32
    return %c0_i32, %c0_i32_0 : i32, i32
  }
  func.func @transform_9(%arg0: i32) -> (i32, i32) {
    %c0_i32 = arith.constant 0 : i32
    %c0_i32_0 = arith.constant 0 : i32
    %c0_i32_1 = arith.constant 0 : i32
    return %c0_i32, %c0_i32_0 : i32, i32
  }
  func.func @transform_10(%arg0: i32) -> (i32, i32) {
    %c0_i32 = arith.constant 0 : i32
    %c0_i32_0 = arith.constant 0 : i32
    %c0_i32_1 = arith.constant 0 : i32
    return %c0_i32, %c0_i32_0 : i32, i32
  }
  func.func @transform_11(%arg0: i32) -> (i32, i32) {
    %c0_i32 = arith.constant 0 : i32
    %c0_i32_0 = arith.constant 0 : i32
    %c0_i32_1 = arith.constant 0 : i32
    return %c0_i32, %c0_i32_0 : i32, i32
  }
  func.func @transform_12(%arg0: i32) -> (i32, i32) {
    %c0_i32 = arith.constant 0 : i32
    %c0_i32_0 = arith.constant 0 : i32
    %c0_i32_1 = arith.constant 0 : i32
    return %c0_i32, %c0_i32_0 : i32, i32
  }
  func.func @transform_13(%arg0: i32) -> (i32, i32) {
    %c0_i32 = arith.constant 0 : i32
    %c0_i32_0 = arith.constant 0 : i32
    %c0_i32_1 = arith.constant 0 : i32
    return %c0_i32, %c0_i32_0 : i32, i32
  }
  func.func @transform_14(%arg0: i32) -> (i32, i32) {
    %c0_i32 = arith.constant 0 : i32
    %c0_i32_0 = arith.constant 0 : i32
    %c0_i32_1 = arith.constant 0 : i32
    return %c0_i32, %c0_i32_0 : i32, i32
  }
  func.func @transform_15(%arg0: i32) -> (i32, i32) {
    %c0_i32 = arith.constant 0 : i32
    %c0_i32_0 = arith.constant 0 : i32
    return %arg0, %c0_i32 : i32, i32
  }
  func.func @transform_16(%arg0: i32) -> (i32, i32) {
    %c0_i32 = arith.constant 0 : i32
    %c0_i32_0 = arith.constant 0 : i32
    return %arg0, %c0_i32 : i32, i32
  }
  func.func @transform_17(%arg0: i32) -> (i32, i32) {
    %c0_i32 = arith.constant 0 : i32
    %c0_i32_0 = arith.constant 0 : i32
    return %arg0, %c0_i32 : i32, i32
  }
}

</mosaic_0001>

<bundles_post_ra>
// kernel: tpu_custom_call.1
= control target key start
LH: loop header
LB: loop body
LE: loop exit
PB: predicated region body
PF: predicated region fallthrough
CT: control target
= control target key end

     0   :  { %s2285_s0 = inlined_call_operand.hbm [shape: f32[16,128], index: 0, kind: input, shape index: {}]   ;;  %s2286_s1 = inlined_call_operand.hbm [shape: f32[128,384], index: 1, kind: input, shape index: {}]   ;;  %s2287_s2 = inlined_call_operand.vmem [shape: f32[1,384], index: 2, kind: input, shape index: {}]   ;;  %s2288_s3 = inlined_call_operand.hbm [shape: f32[128,128], index: 3, kind: input, shape index: {}]   ;;  %s2289_s4 = inlined_call_operand.vmem [shape: f32[1,128], index: 4, kind: input, shape index: {}]   ;;  %s2290_s5 = inlined_call_operand.hbm [shape: f32[128,128], index: 5, kind: input, shape index: {}]   ;;  %s2291_s6 = inlined_call_operand.vmem [shape: f32[1,128], index: 6, kind: input, shape index: {}]   ;;  %s2292_s7 = inlined_call_operand.hbm [shape: f32[128,128], index: 7, kind: input, shape index: {}]   ;;  %s2293_s8 = inlined_call_operand.vmem [shape: f32[1,128], index: 8, kind: input, shape index: {}]   ;;  %s2294_s9 = inlined_call_operand.hbm [shape: f32[128,128], index: 9, kind: input, shape index: {}]   ;;  %s2295_s10 = inlined_call_operand.vmem [shape: f32[1,128], index: 10, kind: input, shape index: {}]   ;;  %s2296_s11 = inlined_call_operand.hbm [shape: f32[128,128], index: 11, kind: input, shape index: {}]   ;;  %s2297_s12 = inlined_call_operand.vmem [shape: f32[1,128], index: 12, kind: input, shape index: {}]   ;;  %s2298_s13 = inlined_call_operand.hbm [shape: f32[128,128], index: 13, kind: input, shape index: {}]   ;;  %s2299_s14 = inlined_call_operand.vmem [shape: f32[1,128], index: 14, kind: input, shape index: {}]   ;;  %s2300_s15 = inlined_call_operand.hbm [shape: f32[16,128], index: 15, kind: output, shape index: {0}]   ;;  %s2301_s16 = inlined_call_operand.hbm [shape: f32[16,128], index: 16, kind: output, shape index: {1}]   ;;  %s2302_s17 = inlined_call_operand.hbm [shape: f32[16,128], index: 17, kind: output, shape index: {2}]  }
   0x1   :  { %2306 = sst [smem:[#allocation27_spill]] %s2285_s0 }
   0x2   :  { %2307 = sst [smem:[#allocation28_spill]] %s2286_s1 }
   0x3   :  { %2308 = sst [smem:[#allocation29_spill]] %s2299_s14 }
   0x4   :  { %2309 = sst [smem:[#allocation30_spill]] %s2302_s17 }
   0x5   :  { %23 = vsyncpa [#allocation3], 0 }
   0x6   :  { %24 = vsyncpa [#allocation6], 0 }
   0x7   :  { %25 = vsyncpa [#allocation9], 0 }
   0x8   :  { %26 = vsyncpa [#allocation12], 0 }
   0x9   :  { %27 = vsyncpa [#allocation15], 0 }
   0xa   :  { %28 = vsyncpa [#allocation4], 0 }
   0xb   :  { %29 = vsyncpa [#allocation18], 0  ;;  %s1986_s24 = smov [#allocation5]   ;;  %s2310_s28 = sld [smem:[#allocation28_spill]] }
   0xc   :  { %s47_s25 = sshll.u32 %s1986_s24, 4  ;;  %s48_s25 = int_to_ptr.vmem [resolvable:$true] %s47_s25 }
  0x11   :  { %s1730_s29 = scalar_lea.hbm %s2310_s28, 6144 }
  0x12   :  { %p1731_p0 = scmp.ne.s32.totalorder %s2310_s28, %s1730_s29  ;;  %p1734_p1 = scmp.lt.u32.totalorder %s1730_s29, %s2310_s28 }
  0x14   :  { %p1736_p2 = pnand %p1734_p1, %p1731_p0 }
  0x16   :  { %1739 = shalt.err (!%p1736_p2)
}
  0x17   :  { %s1740_s1 = scalar_lea.vmem %s48_s25, 6144  ;;  %p1745_p4 = scmp.lt.s32.totalorder %s48_s25, %s48_s25 }
  0x18   :  { %p1741_p3 = scmp.ne.s32.totalorder %s48_s25, %s1740_s1  ;;  %p1746_p5 = scmp.lt.s32.totalorder %s1740_s1, %s1740_s1 }
  0x1a   :  { %p1747_p6 = por %p1746_p5, %p1745_p4 }
  0x1c   :  { %p1748_p7 = pnand %p1747_p6, %p1741_p3 }
  0x1e   :  { %1751 = shalt.err (!%p1748_p7)
}
  0x1f   :  { %s1987_s20 = smov 384   ;;  %s1988_s21 = smov 24  }
  0x20   :  { %53 = dma.hbm_to_vmem [thread:$0]  %s2310_s28, 6144, %s48_s25, [#allocation6], %s1987_s20, %s1987_s20, %s1988_s21  }
  0x21   :  { %s1989_s24 = smov [#allocation8]   ;;  %s1990_s27 = smov [#allocation11]  }
  0x22   :  { %s75_s26 = sshll.u32 %s1989_s24, 4  ;;  %s103_s29 = sshll.u32 %s1990_s27, 4  ;;  %s76_s26 = int_to_ptr.vmem [resolvable:$true] %s75_s26  ;;  %s104_s29 = int_to_ptr.vmem [resolvable:$true] %s103_s29 }
  0x23   :  { %s1752_s18 = scalar_lea.hbm %s2290_s5, 2048 }
  0x24   :  { %p1753_p8 = scmp.ne.s32.totalorder %s2290_s5, %s1752_s18  ;;  %p1756_p9 = scmp.lt.u32.totalorder %s1752_s18, %s2290_s5 }
  0x26   :  { %p1758_p10 = pnand %p1756_p9, %p1753_p8 }
  0x28   :  { %1761 = shalt.err (!%p1758_p10)
}
  0x29   :  { %s1762_s25 = scalar_lea.vmem %s76_s26, 2048  ;;  %p1767_p12 = scmp.lt.s32.totalorder %s76_s26, %s76_s26 }
  0x2a   :  { %p1763_p11 = scmp.ne.s32.totalorder %s76_s26, %s1762_s25  ;;  %p1768_p13 = scmp.lt.s32.totalorder %s1762_s25, %s1762_s25 }
  0x2c   :  { %p1769_p0 = por %p1768_p13, %p1767_p12 }
  0x2e   :  { %p1770_p1 = pnand %p1769_p0, %p1763_p11 }
  0x30   :  { %1773 = shalt.err (!%p1770_p1)
}
  0x31   :  { %s1991_s28 = smov 128   ;;  %s1992_s20 = smov 8  }
  0x32   :  { %81 = dma.hbm_to_vmem [thread:$0]  %s2290_s5, 2048, %s76_s26, [#allocation9], %s1991_s28, %s1991_s28, %s1992_s20  }
  0x33   :  { %s1774_s23 = scalar_lea.hbm %s2294_s9, 2048 }
  0x34   :  { %p1775_p2 = scmp.ne.s32.totalorder %s2294_s9, %s1774_s23  ;;  %p1778_p3 = scmp.lt.u32.totalorder %s1774_s23, %s2294_s9 }
  0x36   :  { %p1780_p4 = pnand %p1778_p3, %p1775_p2 }
  0x38   :  { %1783 = shalt.err (!%p1780_p4)
}
  0x39   :  { %s1784_s18 = scalar_lea.vmem %s104_s29, 2048  ;;  %p1789_p6 = scmp.lt.s32.totalorder %s104_s29, %s104_s29 }
  0x3a   :  { %p1785_p5 = scmp.ne.s32.totalorder %s104_s29, %s1784_s18  ;;  %p1790_p7 = scmp.lt.s32.totalorder %s1784_s18, %s1784_s18 }
  0x3c   :  { %p1791_p8 = por %p1790_p7, %p1789_p6 }
  0x3e   :  { %p1792_p9 = pnand %p1791_p8, %p1785_p5 }
  0x40   :  { %1795 = shalt.err (!%p1792_p9)
}
  0x41   :  { %109 = dma.hbm_to_vmem [thread:$0]  %s2294_s9, 2048, %s104_s29, [#allocation12], %s1991_s28, %s1991_s28, %s1992_s20  }
  0x42   :  { %s1993_s19 = smov [#allocation2]   ;;  %s1994_s25 = smov [#allocation7]  }
  0x43   :  { %s35_s1 = sshll.u32 %s1993_s19, 4  ;;  %s61_s21 = sshll.u32 %s1994_s25, 4  ;;  %s36_s1 = int_to_ptr.vmem [resolvable:$true] %s35_s1  ;;  %s62_s21 = int_to_ptr.vmem [resolvable:$true] %s61_s21 }
  0x44   :  { %s2311_s17 = sld [smem:[#allocation27_spill]] }
  0x4a   :  { %s1796_s23 = scalar_lea.hbm %s2311_s17, 256 }
  0x4b   :  { %p1797_p10 = scmp.ne.s32.totalorder %s2311_s17, %s1796_s23  ;;  %p1800_p11 = scmp.lt.u32.totalorder %s1796_s23, %s2311_s17 }
  0x4d   :  { %p1802_p12 = pnand %p1800_p11, %p1797_p10 }
  0x4f   :  { %1805 = shalt.err (!%p1802_p12)
}
  0x50   :  { %s1806_s9 = scalar_lea.vmem %s36_s1, 256  ;;  %p1811_p0 = scmp.lt.s32.totalorder %s36_s1, %s36_s1 }
  0x51   :  { %p1807_p13 = scmp.ne.s32.totalorder %s36_s1, %s1806_s9  ;;  %p1812_p1 = scmp.lt.s32.totalorder %s1806_s9, %s1806_s9 }
  0x53   :  { %p1813_p2 = por %p1812_p1, %p1811_p0 }
  0x55   :  { %p1814_p3 = pnand %p1813_p2, %p1807_p13 }
  0x57   :  { %1817 = shalt.err (!%p1814_p3)
}
  0x58   :  { %41 = dma.hbm_to_vmem [thread:$0]  %s2311_s17, 256, %s36_s1, [#allocation3], %s1991_s28, %s1991_s28, %s1992_s20  }
  0x59   :  { %s1818_s19 = scalar_lea.hbm %s2288_s3, 2048 }
  0x5a   :  { %p1819_p4 = scmp.ne.s32.totalorder %s2288_s3, %s1818_s19  ;;  %p1822_p5 = scmp.lt.u32.totalorder %s1818_s19, %s2288_s3 }
  0x5c   :  { %p1824_p6 = pnand %p1822_p5, %p1819_p4 }
  0x5e   :  { %1827 = shalt.err (!%p1824_p6)
}
  0x5f   :  { %s1828_s24 = scalar_lea.vmem %s62_s21, 2048  ;;  %p1833_p8 = scmp.lt.s32.totalorder %s62_s21, %s62_s21 }
  0x60   :  { %p1829_p7 = scmp.ne.s32.totalorder %s62_s21, %s1828_s24  ;;  %p1834_p9 = scmp.lt.s32.totalorder %s1828_s24, %s1828_s24 }
  0x62   :  { %p1835_p10 = por %p1834_p9, %p1833_p8 }
  0x64   :  { %p1836_p11 = pnand %p1835_p10, %p1829_p7 }
  0x66   :  { %1839 = shalt.err (!%p1836_p11)
}
  0x67   :  { %67 = dma.hbm_to_vmem [thread:$0]  %s2288_s3, 2048, %s62_s21, [#allocation6], %s1991_s28, %s1991_s28, %s1992_s20  }
  0x68   :  { %s1995_s27 = smov [#allocation10]   ;;  %s1996_s30 = smov [#allocation13]  }
  0x69   :  { %s89_s0 = sshll.u32 %s1995_s27, 4  ;;  %s117_s9 = sshll.u32 %s1996_s30, 4  ;;  %s90_s0 = int_to_ptr.vmem [resolvable:$true] %s89_s0  ;;  %s118_s9 = int_to_ptr.vmem [resolvable:$true] %s117_s9 }
  0x6a   :  { %s1840_s5 = scalar_lea.hbm %s2292_s7, 2048 }
  0x6b   :  { %p1841_p12 = scmp.ne.s32.totalorder %s2292_s7, %s1840_s5  ;;  %p1844_p13 = scmp.lt.u32.totalorder %s1840_s5, %s2292_s7 }
  0x6d   :  { %p1846_p0 = pnand %p1844_p13, %p1841_p12 }
  0x6f   :  { %1849 = shalt.err (!%p1846_p0)
}
  0x70   :  { %s1850_s3 = scalar_lea.vmem %s90_s0, 2048  ;;  %p1855_p2 = scmp.lt.s32.totalorder %s90_s0, %s90_s0 }
  0x71   :  { %p1851_p1 = scmp.ne.s32.totalorder %s90_s0, %s1850_s3  ;;  %p1856_p3 = scmp.lt.s32.totalorder %s1850_s3, %s1850_s3 }
  0x73   :  { %p1857_p4 = por %p1856_p3, %p1855_p2 }
  0x75   :  { %p1858_p5 = pnand %p1857_p4, %p1851_p1 }
  0x77   :  { %1861 = shalt.err (!%p1858_p5)
}
  0x78   :  { %95 = dma.hbm_to_vmem [thread:$0]  %s2292_s7, 2048, %s90_s0, [#allocation9], %s1991_s28, %s1991_s28, %s1992_s20  }
  0x79   :  { %s1862_s1 = scalar_lea.hbm %s2296_s11, 2048 }
  0x7a   :  { %p1863_p6 = scmp.ne.s32.totalorder %s2296_s11, %s1862_s1  ;;  %p1866_p7 = scmp.lt.u32.totalorder %s1862_s1, %s2296_s11 }
  0x7c   :  { %p1868_p8 = pnand %p1866_p7, %p1863_p6 }
  0x7e   :  { %1871 = shalt.err (!%p1868_p8)
}
  0x7f   :  { %s1872_s18 = scalar_lea.vmem %s118_s9, 2048  ;;  %p1877_p10 = scmp.lt.s32.totalorder %s118_s9, %s118_s9 }
  0x80   :  { %p1873_p9 = scmp.ne.s32.totalorder %s118_s9, %s1872_s18  ;;  %p1878_p11 = scmp.lt.s32.totalorder %s1872_s18, %s1872_s18 }
  0x82   :  { %p1879_p12 = por %p1878_p11, %p1877_p10 }
  0x84   :  { %p1880_p13 = pnand %p1879_p12, %p1873_p9 }
  0x86   :  { %1883 = shalt.err (!%p1880_p13)
}
  0x87   :  { %123 = dma.hbm_to_vmem [thread:$0]  %s2296_s11, 2048, %s118_s9, [#allocation12], %s1991_s28, %s1991_s28, %s1992_s20  }
  0x88   :  { %s1997_s5 = smov [#allocation14]   ;;  %s1884_s22 = scalar_lea.hbm %s2298_s13, 2048 }
  0x89   :  { %s131_s26 = sshll.u32 %s1997_s5, 4  ;;  %p1885_p0 = scmp.ne.s32.totalorder %s2298_s13, %s1884_s22  ;;  %s132_s26 = int_to_ptr.vmem [resolvable:$true] %s131_s26 }
  0x8a   :  { %p1888_p1 = scmp.lt.u32.totalorder %s1884_s22, %s2298_s13 }
  0x8c   :  { %p1890_p2 = pnand %p1888_p1, %p1885_p0 }
  0x8e   :  { %1893 = shalt.err (!%p1890_p2)
}
  0x8f   :  { %s1894_s24 = scalar_lea.vmem %s132_s26, 2048  ;;  %p1899_p4 = scmp.lt.s32.totalorder %s132_s26, %s132_s26 }
  0x90   :  { %p1895_p3 = scmp.ne.s32.totalorder %s132_s26, %s1894_s24  ;;  %p1900_p5 = scmp.lt.s32.totalorder %s1894_s24, %s1894_s24 }
  0x92   :  { %p1901_p6 = por %p1900_p5, %p1899_p4 }
  0x94   :  { %p1902_p7 = pnand %p1901_p6, %p1895_p3 }
  0x96   :  { %1905 = shalt.err (!%p1902_p7)
}
  0x97   :  { %137 = dma.hbm_to_vmem [thread:$0]  %s2298_s13, 2048, %s132_s26, [#allocation15], %s1991_s28, %s1991_s28, %s1992_s20  }
  0x98   :  { %1972 = dma.done.wait [#allocation3], 256  }
  0x99   :  { %1973 = vsyncadd [#allocation3], 4294967040 }
  0x9a   :  { %1974 = dma.done.wait [#allocation6], 8192  }
  0x9b   :  { %1975 = vsyncadd [#allocation6], 4294959104 }
  0x9c   :  { %1976 = dma.done.wait [#allocation9], 4096  }
  0x9d   :  { %1977 = vsyncadd [#allocation9], 4294963200 }
  0x9e   :  { %1978 = dma.done.wait [#allocation12], 4096  }
  0x9f   :  { %1979 = vsyncadd [#allocation12], 4294963200 }
  0xa0   :  { %1980 = dma.done.wait [#allocation15], 2048  }
  0xa1   :  { %1981 = vsyncadd [#allocation15], 4294965248  ;;  %v1998_v0 = vmov 0.0   ;;  %v167_v1 = vld [vmem:[#allocation5 + $0x8] sm:$0xff]  ;;  %v170_v2 = vld [vmem:[#allocation5 + $0x20] sm:$0xff]  ;;  %s2000_s5 = smov [#allocation16]  }
  0xa2   :  { %295 = vmatprep.mubr.f32.mxu0 %v1998_v0  ;;  %v166_v3 = vld [vmem:[#allocation5] sm:$0xff]  ;;  %v1442_v4 = vpack.c.bf16 %v170_v2, %v167_v1  ;;  %v169_v5 = vld [vmem:[#allocation5 + $0x18] sm:$0xff]  ;;  %v176_v7 = vld [vmem:[#allocation5 + $0x50] sm:$0xff]  ;;  %s1018_s26 = sshll.u32 %s2000_s5, 4  ;;  %s1019_s26 = int_to_ptr.vmem [resolvable:$true] %s1018_s26 }
  0xa3   :  { %v173_v6 = vld [vmem:[#allocation5 + $0x38] sm:$0xff]  ;;  %v1444_v8 = vpack.c.bf16 %v169_v5, %v166_v3  ;;  %v172_v10 = vld [vmem:[#allocation5 + $0x30] sm:$0xff]  ;;  %v175_v11 = vld [vmem:[#allocation5 + $0x48] sm:$0xff] }
  0xa4   :  { %v1446_v9 = vpack.c.bf16 %v176_v7, %v173_v6  ;;  %v179_v12 = vld [vmem:[#allocation5 + $0x68] sm:$0xff]  ;;  %1443 = vmatprep.subr.bf16.mxu0 %v1442_v4  ;;  %v182_v13 = vld [vmem:[#allocation5 + $0x80] sm:$0xff]  ;;  %v1448_v14 = vpack.c.bf16 %v175_v11, %v172_v10  ;;  %v181_v17 = vld [vmem:[#allocation5 + $0x78] sm:$0xff] }
  0xa5   :  { %1445 = vmatpush1.bf16.msra.mxu0 %v1444_v8  ;;  %v1450_v15 = vpack.c.bf16 %v182_v13, %v179_v12  ;;  %v178_v16 = vld [vmem:[#allocation5 + $0x60] sm:$0xff]  ;;  %v185_v18 = vld [vmem:[#allocation5 + $0x98] sm:$0xff]  ;;  %v188_v19 = vld [vmem:[#allocation5 + $0xb0] sm:$0xff] }
  0xa6   :  { %1447 = vmatprep.subr.bf16.mxu0 %v1446_v9  ;;  %v1452_v20 = vpack.c.bf16 %v181_v17, %v178_v16  ;;  %v1454_v21 = vpack.c.bf16 %v188_v19, %v185_v18  ;;  %v184_v22 = vld [vmem:[#allocation5 + $0x90] sm:$0xff]  ;;  %v187_v23 = vld [vmem:[#allocation5 + $0xa8] sm:$0xff]  ;;  %v194_v25 = vld [vmem:[#allocation5 + $0xe0] sm:$0xff] }
  0xa7   :  { %v191_v24 = vld [vmem:[#allocation5 + $0xc8] sm:$0xff]  ;;  %v2210_v26 = vld [vmem:[#allocation2] sm:$0xff]  ;;  %v1456_v29 = vpack.c.bf16 %v187_v23, %v184_v22  ;;  %v190_v30 = vld [vmem:[#allocation5 + $0xc0] sm:$0xff] }
  0xa8   :  { %v168_v27 = vld [vmem:[#allocation5 + $0x10] sm:$0xff]  ;;  %v171_v28 = vld [vmem:[#allocation5 + $0x28] sm:$0xff]  ;;  %1229 = vmatprep.mubr.f32.mxu1 %v2210_v26  ;;  %v174_v32 = vld [vmem:[#allocation5 + $0x40] sm:$0xff]  ;;  %v1458_v34 = vpack.c.bf16 %v194_v25, %v191_v24 }
  0xa9   :  { %1449 = vmatpush1.bf16.msra.mxu0 %v1448_v14  ;;  %v1474_v31 = vpack.c.bf16 %v171_v28, %v168_v27  ;;  %v177_v33 = vld [vmem:[#allocation5 + $0x58] sm:$0xff]  ;;  %v180_v37 = vld [vmem:[#allocation5 + $0x70] sm:$0xff]  ;;  %v183_v38 = vld [vmem:[#allocation5 + $0x88] sm:$0xff] }
  0xaa   :  { %1451 = vmatprep.subr.bf16.mxu0 %v1450_v15  ;;  %v193_v35 = vld [vmem:[#allocation5 + $0xd8] sm:$0xff]  ;;  %v1478_v36 = vpack.c.bf16 %v177_v33, %v174_v32  ;;  %v200_v40 = vld [vmem:[#allocation5 + $0x110] sm:$0xff]  ;;  %v1482_v43 = vpack.c.bf16 %v183_v38, %v180_v37  ;;  %v199_v45 = vld [vmem:[#allocation5 + $0x108] sm:$0xff] }
  0xab   :  { %v197_v39 = vld [vmem:[#allocation5 + $0xf8] sm:$0xff]  ;;  %1475 = vmatprep.subr.bf16.mxu1 %v1474_v31  ;;  %v1460_v41 = vpack.c.bf16 %v193_v35, %v190_v30  ;;  %v196_v42 = vld [vmem:[#allocation5 + $0xf0] sm:$0xff]  ;;  %v186_v46 = vld [vmem:[#allocation5 + $0xa0] sm:$0xff] }
  0xac   :  { %1477 = vmatpush3.bf16.msra.mxu1 %v1474_v31  ;;  %v1462_v44 = vpack.c.bf16 %v200_v40, %v197_v39  ;;  %v189_v47 = vld [vmem:[#allocation5 + $0xb8] sm:$0xff]  ;;  %v203_v48 = vld [vmem:[#allocation5 + $0x128] sm:$0xff]  ;;  %v206_v49 = vld [vmem:[#allocation5 + $0x140] sm:$0xff]  ;;  %v1464_v50 = vpack.c.bf16 %v199_v45, %v196_v42 }
  0xad   :  { %1453 = vmatpush1.bf16.msra.mxu0 %v1452_v20  ;;  %1479 = vmatprep.subr.bf16.mxu1 %v1478_v36  ;;  %v202_v51 = vld [vmem:[#allocation5 + $0x120] sm:$0xff]  ;;  %v1486_v52 = vpack.c.bf16 %v189_v47, %v186_v46  ;;  %v1466_v53 = vpack.c.bf16 %v206_v49, %v203_v48  ;;  %v205_v54 = vld [vmem:[#allocation5 + $0x138] sm:$0xff]  ;;  %v192_v55 = vld [vmem:[#allocation5 + $0xd0] sm:$0xff] }
  0xae   :  { %1455 = vmatprep.subr.bf16.mxu0 %v1454_v21  ;;  %v195_v56 = vld [vmem:[#allocation5 + $0xe8] sm:$0xff]  ;;  %v209_v57 = vld [vmem:[#allocation5 + $0x158] sm:$0xff]  ;;  %v212_v58 = vld [vmem:[#allocation5 + $0x170] sm:$0xff]  ;;  %v1468_v59 = vpack.c.bf16 %v205_v54, %v202_v51 }
  0xaf   :  { %v208_v60 = vld [vmem:[#allocation5 + $0x150] sm:$0xff]  ;;  %v1490_v61 = vpack.c.bf16 %v195_v56, %v192_v55  ;;  %v1470_v62 = vpack.c.bf16 %v212_v58, %v209_v57  ;;  %v211_v63 = vld [vmem:[#allocation5 + $0x168] sm:$0xff]  ;;  %v198_v1 = vld [vmem:[#allocation5 + $0x100] sm:$0xff] }
  0xb0   :  { %1481 = vmatpush3.bf16.msra.mxu1 %v1478_v36  ;;  %v201_v2 = vld [vmem:[#allocation5 + $0x118] sm:$0xff]  ;;  %v389_v3 = vld [vmem:[#allocation7] sm:$0xff]  ;;  %v390_v4 = vld [vmem:[#allocation7 + $0x8] sm:$0xff]  ;;  %v1472_v5 = vpack.c.bf16 %v211_v63, %v208_v60 }
  0xb1   :  { %1457 = vmatpush1.bf16.msra.mxu0 %v1456_v29  ;;  %1483 = vmatprep.subr.bf16.mxu1 %v1482_v43  ;;  %v1494_v6 = vpack.c.bf16 %v201_v2, %v198_v1  ;;  %v204_v7 = vld [vmem:[#allocation5 + $0x130] sm:$0xff]  ;;  %v207_v8 = vld [vmem:[#allocation5 + $0x148] sm:$0xff]  ;;  %v1506_v9 = vpack.c.bf16 %v390_v4, %v389_v3  ;;  %v392_v11 = vld [vmem:[#allocation7 + $0x18] sm:$0xff] }
  0xb2   :  { %1459 = vmatprep.subr.bf16.mxu0 %v1458_v34  ;;  %v391_v10 = vld [vmem:[#allocation7 + $0x10] sm:$0xff]  ;;  %v1498_v12 = vpack.c.bf16 %v207_v8, %v204_v7  ;;  %v210_v13 = vld [vmem:[#allocation5 + $0x160] sm:$0xff]  ;;  %v213_v14 = vld [vmem:[#allocation5 + $0x178] sm:$0xff] }
  0xb3   :  { %v1510_v15 = vpack.c.bf16 %v392_v11, %v391_v10  ;;  %v393_v16 = vld [vmem:[#allocation7 + $0x20] sm:$0xff]  ;;  %v394_v17 = vld [vmem:[#allocation7 + $0x28] sm:$0xff]  ;;  %v165_v18 = vld [vmem:[#allocation2 + $0x8] sm:$0xff]  ;;  %v1502_v19 = vpack.c.bf16 %v213_v14, %v210_v13 }
  0xb4   :  { %1485 = vmatpush3.bf16.msra.mxu1 %v1482_v43  ;;  %v1514_v20 = vpack.c.bf16 %v394_v17, %v393_v16  ;;  %v395_v21 = vld [vmem:[#allocation7 + $0x30] sm:$0xff]  ;;  %v396_v22 = vld [vmem:[#allocation7 + $0x38] sm:$0xff]  ;;  %v397_v24 = vld [vmem:[#allocation7 + $0x40] sm:$0xff] }
  0xb5   :  { %1461 = vmatpush1.bf16.msra.mxu0 %v1460_v41  ;;  %1487 = vmatprep.subr.bf16.mxu1 %v1486_v52  ;;  %v1518_v23 = vpack.c.bf16 %v396_v22, %v395_v21  ;;  %v398_v25 = vld [vmem:[#allocation7 + $0x48] sm:$0xff]  ;;  %v400_v27 = vld [vmem:[#allocation7 + $0x58] sm:$0xff]  ;;  %v401_v29 = vld [vmem:[#allocation7 + $0x60] sm:$0xff] }
  0xb6   :  { %1463 = vmatprep.subr.bf16.mxu0 %v1462_v44  ;;  %v402_v30 = vld [vmem:[#allocation7 + $0x68] sm:$0xff]  ;;  %v403_v32 = vld [vmem:[#allocation7 + $0x70] sm:$0xff]  ;;  %v404_v33 = vld [vmem:[#allocation7 + $0x78] sm:$0xff] }
  0xb7   :  { %v1530_v31 = vpack.c.bf16 %v402_v30, %v401_v29  ;;  %v1534_v34 = vpack.c.bf16 %v404_v33, %v403_v32  ;;  %v601_v35 = vld [vmem:[#allocation10] sm:$0xff]  ;;  %v602_v36 = vld [vmem:[#allocation10 + $0x8] sm:$0xff]  ;;  %v491_v40 = vld [vmem:[#allocation8 + $0x10] sm:$0xff] }
  0xb8   :  { %1489 = vmatpush3.bf16.msra.mxu1 %v1486_v52  ;;  %v2215_v37 = vpack.c.bf16 %v602_v36, %v601_v35  ;;  %v489_v38 = vld [vmem:[#allocation8] sm:$0xff]  ;;  %v490_v39 = vld [vmem:[#allocation8 + $0x8] sm:$0xff]  ;;  %v492_v42 = vld [vmem:[#allocation8 + $0x18] sm:$0xff] }
  0xb9   :  { %1465 = vmatpush1.bf16.msra.mxu0 %v1464_v50  ;;  %1491 = vmatprep.subr.bf16.mxu1 %v1490_v61  ;;  %v1538_v41 = vpack.c.bf16 %v490_v39, %v489_v38  ;;  %v1542_v43 = vpack.c.bf16 %v492_v42, %v491_v40  ;;  %v493_v44 = vld [vmem:[#allocation8 + $0x20] sm:$0xff]  ;;  %v494_v45 = vld [vmem:[#allocation8 + $0x28] sm:$0xff]  ;;  %v495_v47 = vld [vmem:[#allocation8 + $0x30] sm:$0xff] }
  0xba   :  { %1467 = vmatprep.subr.bf16.mxu0 %v1466_v53  ;;  %v1546_v46 = vpack.c.bf16 %v494_v45, %v493_v44  ;;  %v496_v48 = vld [vmem:[#allocation8 + $0x38] sm:$0xff]  ;;  %v497_v50 = vld [vmem:[#allocation8 + $0x40] sm:$0xff]  ;;  %v498_v51 = vld [vmem:[#allocation8 + $0x48] sm:$0xff] }
  0xbb   :  { %v1550_v49 = vpack.c.bf16 %v496_v48, %v495_v47  ;;  %v1554_v52 = vpack.c.bf16 %v498_v51, %v497_v50  ;;  %v499_v53 = vld [vmem:[#allocation8 + $0x50] sm:$0xff]  ;;  %v500_v54 = vld [vmem:[#allocation8 + $0x58] sm:$0xff]  ;;  %v501_v56 = vld [vmem:[#allocation8 + $0x60] sm:$0xff] }
  0xbc   :  { %1493 = vmatpush3.bf16.msra.mxu1 %v1490_v61  ;;  %v1558_v55 = vpack.c.bf16 %v500_v54, %v499_v53  ;;  %v502_v57 = vld [vmem:[#allocation8 + $0x68] sm:$0xff]  ;;  %v603_v11 = vld [vmem:[#allocation10 + $0x10] sm:$0xff]  ;;  %v605_v17 = vld [vmem:[#allocation10 + $0x20] sm:$0xff] }
  0xbd   :  { %1469 = vmatpush1.bf16.msra.mxu0 %v1468_v59  ;;  %1495 = vmatprep.subr.bf16.mxu1 %v1494_v6  ;;  %v1562_v58 = vpack.c.bf16 %v502_v57, %v501_v56  ;;  %v216_v59 = vlaneseq  ;;  %v611_v30 = vld [vmem:[#allocation10 + $0x50] sm:$0xff]  ;;  %v613_v33 = vld [vmem:[#allocation10 + $0x60] sm:$0xff]  ;;  %v504_v42 = vld [vmem:[#allocation8 + $0x78] sm:$0xff] }
  0xbe   :  { %1471 = vmatprep.subr.bf16.mxu0 %v1470_v62  ;;  %v214_v62 = vld [vmem:[%s2287_s2] sm:$0x7]  ;;  %v701_v44 = vld [vmem:[#allocation11] sm:$0xff]  ;;  %v702_v45 = vld [vmem:[#allocation11 + $0x8] sm:$0xff] }
  0xbf   :  { %v217_v60 = vshrl.u32 %v216_v59, 7  ;;  %v615_v36 = vld [vmem:[#allocation10 + $0x70] sm:$0xff]  ;;  %v704_v53 = vld [vmem:[#allocation11 + $0x18] sm:$0xff]  ;;  %v705_v57 = vld [vmem:[#allocation11 + $0x20] sm:$0xff] }
  0xc0   :  { %1497 = vmatpush3.bf16.msra.mxu1 %v1494_v6  ;;  %v1065_v47 = vld [vmem:[%s2289_s4] ss:$0 sm:$0xff] }
  0xc1   :  { %1473 = vmatpush1.bf16.msra.mxu0 %v1472_v5  ;;  %1499 = vmatprep.subr.bf16.mxu1 %v1498_v12  ;;  %v218_v61 = vsub.s32 0, %v217_v60  ;;  %v222_v63 = vsub.s32 1, %v217_v60  ;;  %v226_v13 = vsub.s32 2, %v217_v60  ;;  %v707_v60 = vld [vmem:[#allocation11 + $0x30] sm:$0xff] }
  0xc2   :  { %1507 = vmatprep.subr.bf16.mxu0 %v1506_v9 }
  0xc3   :  { %v219_v1 = vrot.slane %v214_v62, %v218_v61  ;;  %v223_v2 = vrot.slane %v214_v62, %v222_v63  ;;  %v708_v61 = vld [vmem:[#allocation11 + $0x38] sm:$0xff]  ;;  %v709_v63 = vld [vmem:[#allocation11 + $0x40] sm:$0xff] }
  0xc4   :  { %296 = vmatmul.mubr.f32.vlgmr.msra.gmra.mrb[0].mxu0 %v2210_v26  ;;  %1501 = vmatpush3.bf16.msra.mxu1 %v1498_v12  ;;  %v399_v26 = vld [vmem:[#allocation7 + $0x50] sm:$0xff]  ;;  %v604_v12 = vld [vmem:[#allocation10 + $0x18] sm:$0xff] }
  0xc5   :  { %301 = vmatprep.mubr.f32.mxu0 %v1998_v0  ;;  %1509 = vmatpush3.bf16.msra.mxu0 %v1506_v9  ;;  %v1522_v0 = vpack.c.bf16 %v398_v25, %v397_v24  ;;  %v1526_v28 = vpack.c.bf16 %v400_v27, %v399_v26  ;;  %v1574_v16 = vpack.c.bf16 %v604_v12, %v603_v11  ;;  %v608_v24 = vld [vmem:[#allocation10 + $0x38] sm:$0xff]  ;;  %v609_v27 = vld [vmem:[#allocation10 + $0x40] sm:$0xff]  ;;  %v1067_v12 = vld [vmem:[%s2293_s8] ss:$0 sm:$0xff] }
  0xc6   :  { %1511 = vmatprep.subr.bf16.mxu0 %v1510_v15  ;;  %1503 = vmatprep.subr.bf16.mxu1 %v1502_v19 }
  0xc8   :  { %302 = vmatmul.mubr.f32.gmra.mrb[2].mxu0 %v165_v18  ;;  %1505 = vmatpush3.bf16.msra.mxu1 %v1502_v19  ;;  %v227_v19 = vrot.slane %v214_v62, %v226_v13  ;;  %v1614_v62 = vpack.c.bf16 %v708_v61, %v707_v60  ;;  %v913_v60 = vld [vmem:[#allocation14 + $0x60] sm:$0xff]  ;;  %v914_v61 = vld [vmem:[#allocation14 + $0x68] sm:$0xff] }
  0xc9   :  { %1513 = vmatpush3.bf16.msra.mxu0 %v1510_v15  ;;  %1539 = vmatprep.subr.bf16.mxu1 %v1538_v41 }
  0xca   :  { %1515 = vmatprep.subr.bf16.mxu0 %v1514_v20 }
  0xcb   :  { %1230 = vmatmul.mubr.f32.vlgmr.msra.gmra.mrb[0].mxu1 %v165_v18  ;;  %v606_v18 = vld [vmem:[#allocation10 + $0x28] sm:$0xff] }
  0xcc   :  { %1541 = vmatpush3.bf16.msra.mxu1 %v1538_v41  ;;  %v1578_v21 = vpack.c.bf16 %v606_v18, %v605_v17  ;;  %v503_v41 = vld [vmem:[#allocation8 + $0x70] sm:$0xff] }
  0xcd   :  { %1517 = vmatpush3.bf16.msra.mxu0 %v1514_v20  ;;  %1543 = vmatprep.subr.bf16.mxu1 %v1542_v43 }
  0xce   :  { %1519 = vmatprep.subr.bf16.mxu0 %v1518_v23 }
  0xd0   :  { %1545 = vmatpush3.bf16.msra.mxu1 %v1542_v43  ;;  %v1566_v43 = vpack.c.bf16 %v504_v42, %v503_v41  ;;  %v901_v42 = vld [vmem:[#allocation14] sm:$0xff] }
  0xd1   :  { %1521 = vmatpush3.bf16.msra.mxu0 %v1518_v23  ;;  %1547 = vmatprep.subr.bf16.mxu1 %v1546_v46  ;;  %v607_v23 = vld [vmem:[#allocation10 + $0x30] sm:$0xff] }
  0xd2   :  { %1523 = vmatprep.subr.bf16.mxu0 %v1522_v0  ;;  %v1582_v26 = vpack.c.bf16 %v608_v24, %v607_v23  ;;  %v804_v23 = vld [vmem:[#allocation13 + $0x18] sm:$0xff] }
  0xd4   :  { %1549 = vmatpush3.bf16.msra.mxu1 %v1546_v46  ;;  %v1602_v46 = vpack.c.bf16 %v702_v45, %v701_v44  ;;  %v903_v44 = vld [vmem:[#allocation14 + $0x10] sm:$0xff] }
  0xd5   :  { %1525 = vmatpush3.bf16.msra.mxu0 %v1522_v0  ;;  %1551 = vmatprep.subr.bf16.mxu1 %v1550_v49 }
  0xd6   :  { %1527 = vmatprep.subr.bf16.mxu0 %v1526_v28 }
  0xd8   :  { %1553 = vmatpush3.bf16.msra.mxu1 %v1550_v49 }
  0xd9   :  { %1529 = vmatpush3.bf16.msra.mxu0 %v1526_v28  ;;  %1555 = vmatprep.subr.bf16.mxu1 %v1554_v52  ;;  %v610_v28 = vld [vmem:[#allocation10 + $0x48] sm:$0xff] }
  0xda   :  { %1531 = vmatprep.subr.bf16.mxu0 %v1530_v31  ;;  %v1586_v29 = vpack.c.bf16 %v610_v28, %v609_v27  ;;  %v807_v27 = vld [vmem:[#allocation13 + $0x30] sm:$0xff]  ;;  %v808_v28 = vld [vmem:[#allocation13 + $0x38] sm:$0xff] }
  0xdc   :  { %1557 = vmatpush3.bf16.msra.mxu1 %v1554_v52  ;;  %v703_v52 = vld [vmem:[#allocation11 + $0x10] sm:$0xff] }
  0xdd   :  { %1533 = vmatpush3.bf16.msra.mxu0 %v1530_v31  ;;  %1559 = vmatprep.subr.bf16.mxu1 %v1558_v55  ;;  %v612_v31 = vld [vmem:[#allocation10 + $0x58] sm:$0xff]  ;;  %v1606_v56 = vpack.c.bf16 %v704_v53, %v703_v52 }
  0xde   :  { %1535 = vmatprep.subr.bf16.mxu0 %v1534_v34  ;;  %v1590_v32 = vpack.c.bf16 %v612_v31, %v611_v30  ;;  %v809_v30 = vld [vmem:[#allocation13 + $0x40] sm:$0xff]  ;;  %v810_v31 = vld [vmem:[#allocation13 + $0x48] sm:$0xff]  ;;  %v908_v52 = vld [vmem:[#allocation14 + $0x38] sm:$0xff] }
  0xe0   :  { %1561 = vmatpush3.bf16.msra.mxu1 %v1558_v55 }
  0xe1   :  { %1537 = vmatpush3.bf16.msra.mxu0 %v1534_v34  ;;  %1563 = vmatprep.subr.bf16.mxu1 %v1562_v58  ;;  %v614_v34 = vld [vmem:[#allocation10 + $0x68] sm:$0xff] }
  0xe2   :  { %1571 = vmatprep.subr.bf16.mxu0 %v2215_v37  ;;  %v1594_v35 = vpack.c.bf16 %v614_v34, %v613_v33  ;;  %v811_v33 = vld [vmem:[#allocation13 + $0x50] sm:$0xff]  ;;  %v812_v34 = vld [vmem:[#allocation13 + $0x58] sm:$0xff] }
  0xe4   :  { %1565 = vmatpush3.bf16.msra.mxu1 %v1562_v58  ;;  %v706_v58 = vld [vmem:[#allocation11 + $0x28] sm:$0xff] }
  0xe5   :  { %1567 = vmatprep.subr.bf16.mxu1 %v1566_v43  ;;  %v1610_v59 = vpack.c.bf16 %v706_v58, %v705_v57  ;;  %v911_v57 = vld [vmem:[#allocation14 + $0x50] sm:$0xff]  ;;  %v912_v58 = vld [vmem:[#allocation14 + $0x58] sm:$0xff] }
  0xe8   :  { %1569 = vmatpush3.bf16.msra.mxu1 %v1566_v43  ;;  %v902_v43 = vld [vmem:[#allocation14 + $0x8] sm:$0xff] }
  0xe9   :  { %1603 = vmatprep.subr.bf16.mxu1 %v1602_v46  ;;  %v1666_v45 = vpack.c.bf16 %v902_v43, %v901_v42 }
 0x197   :  { %v297_v3 = vpop.f32.mrb[0].mxu0 }
 0x198   :  { %v298_v4 = vadd.f32 %v297_v3, %v219_v1  ;;  %v299_v5 = vpop.f32.mrb[1].mxu0  ;;  %v711_v3 = vld [vmem:[#allocation11 + $0x50] sm:$0xff] }
 0x199   :  { %v300_v6 = vadd.f32 %v299_v5, %v223_v2 }
 0x19a   :  { %383 = vst [vmem:[#allocation16] sm:$0xff] %v298_v4  ;;  %v712_v4 = vld [vmem:[#allocation11 + $0x58] sm:$0xff] }
 0x19b   :  { %v385_v7 = vmax.f32 %v300_v6, 0.0  ;;  %v303_v8 = vpop.f32.mrb[2].mxu0  ;;  %v1622_v5 = vpack.c.bf16 %v712_v4, %v711_v3  ;;  %v713_v6 = vld [vmem:[#allocation11 + $0x60] sm:$0xff] }
 0x19c   :  { %v304_v9 = vadd.f32 %v303_v8, %v219_v1  ;;  %v305_v10 = vpop.f32.mrb[3].mxu0  ;;  %v710_v1 = vld [vmem:[#allocation11 + $0x48] sm:$0xff] }
 0x19d   :  { %v306_v14 = vadd.f32 %v305_v10, %v223_v2  ;;  %1264 = vmatprep.mubr.f32.mxu0 %v385_v7  ;;  %v1618_v2 = vpack.c.bf16 %v710_v1, %v709_v63  ;;  %v714_v7 = vld [vmem:[#allocation11 + $0x68] sm:$0xff]  ;;  %v716_v10 = vld [vmem:[#allocation11 + $0x78] sm:$0xff]  ;;  %v1066_v63 = vld [vmem:[%s2291_s6] ss:$0 sm:$0xff] }
 0x19e   :  { %384 = vst [vmem:[#allocation16 + $0x8] sm:$0xff] %v304_v9  ;;  %v1231_v20 = vpop.f32.mrb[0].mxu1  ;;  %v1626_v8 = vpack.c.bf16 %v714_v7, %v713_v6  ;;  %v715_v9 = vld [vmem:[#allocation11 + $0x70] sm:$0xff] }
 0x19f   :  { %v386_v15 = vmax.f32 %v306_v14, 0.0  ;;  %v374_v22 = vpop.f32.mrb[1].mxu1  ;;  %v380_v39 = vadd.f32 %v1231_v20, %v227_v19  ;;  %v1630_v11 = vpack.c.bf16 %v716_v10, %v715_v9  ;;  %v802_v20 = vld [vmem:[#allocation13 + $0x8] sm:$0xff] }
 0x1a0   :  { %v375_v25 = vadd.f32 %v374_v22, %v227_v19  ;;  %v801_v19 = vld [vmem:[#allocation13] sm:$0xff]  ;;  %v803_v22 = vld [vmem:[#allocation13 + $0x10] sm:$0xff] }
 0x1a1   :  { %1265 = vmatmul.mubr.f32.vlgmr.msra.gmra.mrb[4].mxu0 %v386_v15  ;;  %v388_v40 = vmax.f32 %v380_v39, 0.0  ;;  %v1638_v24 = vpack.c.bf16 %v804_v23, %v803_v22  ;;  %v815_v39 = vld [vmem:[#allocation13 + $0x70] sm:$0xff]  ;;  %v916_v23 = vld [vmem:[#allocation14 + $0x78] sm:$0xff] }
 0x1a2   :  { %1573 = vmatpush3.bf16.msra.mxu0 %v2215_v37  ;;  %v387_v0 = vmax.f32 %v375_v25, 0.0  ;;  %v616_v37 = vld [vmem:[#allocation10 + $0x78] sm:$0xff]  ;;  %v805_v25 = vld [vmem:[#allocation13 + $0x20] sm:$0xff]  ;;  %v915_v22 = vld [vmem:[#allocation14 + $0x70] sm:$0xff] }
 0x1a3   :  { %1575 = vmatprep.subr.bf16.mxu0 %v1574_v16  ;;  %v1598_v38 = vpack.c.bf16 %v616_v37, %v615_v36  ;;  %v813_v36 = vld [vmem:[#allocation13 + $0x60] sm:$0xff]  ;;  %v814_v37 = vld [vmem:[#allocation13 + $0x68] sm:$0xff] }
 0x1a4   :  { %1334 = vmatprep.mubr.f32.mxu0 %v387_v0  ;;  %v806_v0 = vld [vmem:[#allocation13 + $0x28] sm:$0xff] }
 0x1a6   :  { %1577 = vmatpush3.bf16.msra.mxu0 %v1574_v16 }
 0x1a7   :  { %1579 = vmatprep.subr.bf16.mxu0 %v1578_v21 }
 0x1aa   :  { %1581 = vmatpush3.bf16.msra.mxu0 %v1578_v21  ;;  %v1634_v21 = vpack.c.bf16 %v802_v20, %v801_v19 }
 0x1ab   :  { %1583 = vmatprep.subr.bf16.mxu0 %v1582_v26 }
 0x1ae   :  { %1585 = vmatpush3.bf16.msra.mxu0 %v1582_v26  ;;  %v1642_v26 = vpack.c.bf16 %v806_v0, %v805_v25  ;;  %v1069_v25 = vld [vmem:[%s2297_s12] ss:$0 sm:$0xff] }
 0x1af   :  { %1587 = vmatprep.subr.bf16.mxu0 %v1586_v29 }
 0x1b2   :  { %1589 = vmatpush3.bf16.msra.mxu0 %v1586_v29  ;;  %v1646_v29 = vpack.c.bf16 %v808_v28, %v807_v27 }
 0x1b3   :  { %1591 = vmatprep.subr.bf16.mxu0 %v1590_v32 }
 0x1b6   :  { %1593 = vmatpush3.bf16.msra.mxu0 %v1590_v32  ;;  %v1650_v32 = vpack.c.bf16 %v810_v31, %v809_v30 }
 0x1b7   :  { %1595 = vmatprep.subr.bf16.mxu0 %v1594_v35 }
 0x1ba   :  { %1597 = vmatpush3.bf16.msra.mxu0 %v1594_v35  ;;  %v1654_v35 = vpack.c.bf16 %v812_v34, %v811_v33 }
 0x1bb   :  { %1599 = vmatprep.subr.bf16.mxu0 %v1598_v38 }
 0x1be   :  { %1601 = vmatpush3.bf16.msra.mxu0 %v1598_v38  ;;  %v1658_v38 = vpack.c.bf16 %v814_v37, %v813_v36 }
 0x1bf   :  { %1635 = vmatprep.subr.bf16.mxu0 %v1634_v21 }
 0x1c1   :  { %1335 = vmatmul.mubr.f32.vlgmr.msra.gmra.mrb[6].mxu0 %v388_v40  ;;  %v816_v40 = vld [vmem:[#allocation13 + $0x78] sm:$0xff] }
 0x1c2   :  { %1637 = vmatpush3.bf16.msra.mxu0 %v1634_v21  ;;  %v1662_v41 = vpack.c.bf16 %v816_v40, %v815_v39 }
 0x1c3   :  { %1639 = vmatprep.subr.bf16.mxu0 %v1638_v24 }
 0x1c6   :  { %1641 = vmatpush3.bf16.msra.mxu0 %v1638_v24  ;;  %v1694_v24 = vpack.c.bf16 %v916_v23, %v915_v22 }
 0x1c7   :  { %1643 = vmatprep.subr.bf16.mxu0 %v1642_v26 }
 0x1ca   :  { %1645 = vmatpush3.bf16.msra.mxu0 %v1642_v26 }
 0x1cb   :  { %1647 = vmatprep.subr.bf16.mxu0 %v1646_v29 }
 0x1ce   :  { %1649 = vmatpush3.bf16.msra.mxu0 %v1646_v29 }
 0x1cf   :  { %1651 = vmatprep.subr.bf16.mxu0 %v1650_v32 }
 0x1d2   :  { %1653 = vmatpush3.bf16.msra.mxu0 %v1650_v32 }
 0x1d3   :  { %1655 = vmatprep.subr.bf16.mxu0 %v1654_v35 }
 0x1d6   :  { %1657 = vmatpush3.bf16.msra.mxu0 %v1654_v35 }
 0x1d7   :  { %1659 = vmatprep.subr.bf16.mxu0 %v1658_v38 }
 0x1da   :  { %1661 = vmatpush3.bf16.msra.mxu0 %v1658_v38 }
 0x1db   :  { %1663 = vmatprep.subr.bf16.mxu0 %v1662_v41 }
 0x1de   :  { %1665 = vmatpush3.bf16.msra.mxu0 %v1662_v41 }
 0x274   :  { %v1266_v48 = vpop.f32.mrb[4].mxu0 }
 0x275   :  { %v484_v49 = vadd.f32 %v1266_v48, %v1065_v47  ;;  %v478_v50 = vpop.f32.mrb[5].mxu0  ;;  %v905_v48 = vld [vmem:[#allocation14 + $0x20] sm:$0xff] }
 0x276   :  { %v479_v51 = vadd.f32 %v1065_v47, %v478_v50 }
 0x277   :  { %v488_v55 = vmax.f32 %v484_v49, 0.0  ;;  %v906_v49 = vld [vmem:[#allocation14 + $0x28] sm:$0xff] }
 0x278   :  { %v487_v54 = vmax.f32 %v479_v51, 0.0  ;;  %v1674_v50 = vpack.c.bf16 %v906_v49, %v905_v48  ;;  %v907_v51 = vld [vmem:[#allocation14 + $0x30] sm:$0xff] }
 0x279   :  { %v1678_v53 = vpack.c.bf16 %v908_v52, %v907_v51 }
 0x27a   :  { %1299 = vmatprep.mubr.f32.mxu1 %v487_v54  ;;  %v909_v54 = vld [vmem:[#allocation14 + $0x40] sm:$0xff] }
 0x27b   :  { %1300 = vmatmul.mubr.f32.vlgmr.msra.gmra.mrb[2].mxu1 %v488_v55  ;;  %v910_v55 = vld [vmem:[#allocation14 + $0x48] sm:$0xff] }
 0x27c   :  { %1605 = vmatpush3.bf16.msra.mxu1 %v1602_v46  ;;  %v904_v46 = vld [vmem:[#allocation14 + $0x18] sm:$0xff] }
 0x27d   :  { %1607 = vmatprep.subr.bf16.mxu1 %v1606_v56  ;;  %v1670_v47 = vpack.c.bf16 %v904_v46, %v903_v44 }
 0x280   :  { %1609 = vmatpush3.bf16.msra.mxu1 %v1606_v56  ;;  %v1682_v56 = vpack.c.bf16 %v910_v55, %v909_v54 }
 0x281   :  { %1611 = vmatprep.subr.bf16.mxu1 %v1610_v59 }
 0x284   :  { %1613 = vmatpush3.bf16.msra.mxu1 %v1610_v59  ;;  %v1686_v59 = vpack.c.bf16 %v912_v58, %v911_v57 }
 0x285   :  { %1615 = vmatprep.subr.bf16.mxu1 %v1614_v62 }
 0x288   :  { %1617 = vmatpush3.bf16.msra.mxu1 %v1614_v62  ;;  %v1690_v62 = vpack.c.bf16 %v914_v61, %v913_v60 }
 0x289   :  { %1619 = vmatprep.subr.bf16.mxu1 %v1618_v2 }
 0x28c   :  { %1621 = vmatpush3.bf16.msra.mxu1 %v1618_v2 }
 0x28d   :  { %1623 = vmatprep.subr.bf16.mxu1 %v1622_v5 }
 0x290   :  { %1625 = vmatpush3.bf16.msra.mxu1 %v1622_v5 }
 0x291   :  { %1627 = vmatprep.subr.bf16.mxu1 %v1626_v8 }
 0x294   :  { %v1336_v13 = vpop.f32.mrb[6].mxu0  ;;  %1629 = vmatpush3.bf16.msra.mxu1 %v1626_v8 }
 0x295   :  { %v696_v14 = vadd.f32 %v1336_v13, %v1067_v12  ;;  %v690_v15 = vpop.f32.mrb[7].mxu0  ;;  %1631 = vmatprep.subr.bf16.mxu1 %v1630_v11 }
 0x296   :  { %v691_v16 = vadd.f32 %v1067_v12, %v690_v15 }
 0x297   :  { %v700_v18 = vmax.f32 %v696_v14, 0.0  ;;  %v1068_v14 = vld [vmem:[%s2295_s10] ss:$0 sm:$0xff]  ;;  %s1999_s10 = smov [#allocation17]  }
 0x298   :  { %v699_v17 = vmax.f32 %v691_v16, 0.0  ;;  %1633 = vmatpush3.bf16.msra.mxu1 %v1630_v11  ;;  %s1030_s0 = sshll.u32 %s1999_s10, 4  ;;  %s1031_s0 = int_to_ptr.vmem [resolvable:$true] %s1030_s0 }
 0x299   :  { %1667 = vmatprep.subr.bf16.mxu1 %v1666_v45  ;;  %s1906_s19 = scalar_lea.vmem %s1031_s0, 256  ;;  %p1911_p9 = scmp.lt.s32.totalorder %s1031_s0, %s1031_s0 }
 0x29a   :  { %1369 = vmatprep.mubr.f32.mxu1 %v699_v17  ;;  %p1907_p8 = scmp.ne.s32.totalorder %s1031_s0, %s1906_s19  ;;  %p1912_p10 = scmp.lt.s32.totalorder %s1906_s19, %s1906_s19 }
 0x29b   :  { %1370 = vmatmul.mubr.f32.vlgmr.msra.gmra.mrb[4].mxu1 %v700_v18 }
 0x29c   :  { %1669 = vmatpush3.bf16.msra.mxu1 %v1666_v45  ;;  %p1913_p11 = por %p1912_p10, %p1911_p9 }
 0x29d   :  { %1671 = vmatprep.subr.bf16.mxu1 %v1670_v47 }
 0x29e   :  { %p1914_p12 = pnand %p1913_p11, %p1907_p8 }
 0x2a0   :  { %1673 = vmatpush3.bf16.msra.mxu1 %v1670_v47 }
 0x2a1   :  { %1675 = vmatprep.subr.bf16.mxu1 %v1674_v50 }
 0x2a4   :  { %1677 = vmatpush3.bf16.msra.mxu1 %v1674_v50 }
 0x2a5   :  { %1679 = vmatprep.subr.bf16.mxu1 %v1678_v53 }
 0x2a8   :  { %1681 = vmatpush3.bf16.msra.mxu1 %v1678_v53 }
 0x2a9   :  { %1683 = vmatprep.subr.bf16.mxu1 %v1682_v56 }
 0x2ac   :  { %1685 = vmatpush3.bf16.msra.mxu1 %v1682_v56 }
 0x2ad   :  { %1687 = vmatprep.subr.bf16.mxu1 %v1686_v59 }
 0x2b0   :  { %1689 = vmatpush3.bf16.msra.mxu1 %v1686_v59 }
 0x2b1   :  { %1691 = vmatprep.subr.bf16.mxu1 %v1690_v62 }
 0x2b4   :  { %1693 = vmatpush3.bf16.msra.mxu1 %v1690_v62 }
 0x2b5   :  { %1695 = vmatprep.subr.bf16.mxu1 %v1694_v24 }
 0x2b8   :  { %1697 = vmatpush3.bf16.msra.mxu1 %v1694_v24 }
 0x34e   :  { %v1301_v1 = vpop.f32.mrb[2].mxu1 }
 0x34f   :  { %v584_v2 = vadd.f32 %v1301_v1, %v1066_v63  ;;  %v578_v3 = vpop.f32.mrb[3].mxu1 }
 0x350   :  { %v579_v4 = vadd.f32 %v1066_v63, %v578_v3 }
 0x351   :  { %v588_v5 = vsub.f32 0.0, %v584_v2 }
 0x352   :  { %v587_v6 = vsub.f32 0.0, %v579_v4 }
 0x353   :  { %v591_v7 = vmul.f32 1.442695, %v588_v5 }
 0x354   :  { %v589_v8 = vmul.f32 1.442695, %v587_v6 }
 0x355   :  { %1714 = vpow2.f32 %v591_v7 }
 0x356   :  { %1716 = vpow2.f32 %v589_v8 }
 0x35f   :  { %v1715_v9 = vpop.eup %1714 }
 0x360   :  { %v1717_v10 = vpop.eup %1716  ;;  %v594_v11 = vadd.f32 1.0, %v1715_v9 }
 0x361   :  { %v593_v12 = vadd.f32 1.0, %v1717_v10 }
 0x362   :  { %1718 = vrcp.f32 %v594_v11 }
 0x363   :  { %1720 = vrcp.f32 %v593_v12 }
 0x36c   :  { %v1719_v13 = vpop.eup %1718 }
 0x36d   :  { %v1721_v15 = vpop.eup %1720  ;;  %600 = vst [vmem:[#allocation17 + $0x8] sm:$0xff] %v1719_v13 }
 0x36e   :  { %599 = vst [vmem:[#allocation17] sm:$0xff] %v1721_v15  ;;  %v1371_v16 = vpop.f32.mrb[4].mxu1 }
 0x36f   :  { %v796_v17 = vadd.f32 %v1371_v16, %v1068_v14  ;;  %v790_v18 = vpop.f32.mrb[5].mxu1 }
 0x370   :  { %v791_v19 = vadd.f32 %v1068_v14, %v790_v18 }
 0x371   :  { %v800_v21 = vmax.f32 %v796_v17, 0.0 }
 0x372   :  { %v799_v20 = vmax.f32 %v791_v19, 0.0 }
 0x374   :  { %1404 = vmatprep.mubr.f32.mxu0 %v799_v20 }
 0x375   :  { %1405 = vmatmul.mubr.f32.vlgmr.msra.gmra.mrb[8].mxu0 %v800_v21 }
 0x448   :  { %v1406_v0 = vpop.f32.mrb[8].mxu0 }
 0x449   :  { %v896_v26 = vadd.f32 %v1406_v0, %v1069_v25  ;;  %v890_v27 = vpop.f32.mrb[9].mxu0 }
 0x44a   :  { %v891_v28 = vadd.f32 %v1069_v25, %v890_v27 }
 0x44b   :  { %v900_v30 = vmax.f32 %v896_v26, 0.0 }
 0x44c   :  { %v899_v29 = vmax.f32 %v891_v28, 0.0 }
 0x44e   :  { %1439 = vmatprep.mubr.f32.mxu1 %v899_v29 }
 0x44f   :  { %1440 = vmatmul.mubr.f32.vlgmr.msra.gmra.mrb[6].mxu1 %v900_v30 }
 0x450   :  { %1917 = shalt.err (!%p1914_p12)
}
 0x451   :  { %s1918_s22 = scalar_lea.hbm %s2301_s16, 256 }
 0x452   :  { %p1919_p13 = scmp.ne.s32.totalorder %s2301_s16, %s1918_s22  ;;  %p1922_p0 = scmp.lt.u32.totalorder %s1918_s22, %s2301_s16 }
 0x454   :  { %p1924_p1 = pnand %p1922_p0, %p1919_p13 }
 0x456   :  { %1927 = shalt.err (!%p1924_p1)
}
 0x457   :  { %1036 = dma.vmem_to_hbm [thread:$0]  %s1031_s0, 256, %s2301_s16, [#allocation18], %s1991_s28, %s1991_s28, %s1992_s20  }
 0x458   :  { %s1928_s9 = scalar_lea.vmem %s1019_s26, 256  ;;  %p1933_p3 = scmp.lt.s32.totalorder %s1019_s26, %s1019_s26 }
 0x459   :  { %p1929_p2 = scmp.ne.s32.totalorder %s1019_s26, %s1928_s9  ;;  %p1934_p4 = scmp.lt.s32.totalorder %s1928_s9, %s1928_s9 }
 0x45b   :  { %p1935_p5 = por %p1934_p4, %p1933_p3 }
 0x45d   :  { %p1936_p6 = pnand %p1935_p5, %p1929_p2 }
 0x45f   :  { %1939 = shalt.err (!%p1936_p6)
}
 0x460   :  { %s1940_s2 = scalar_lea.hbm %s2300_s15, 256 }
 0x461   :  { %p1941_p7 = scmp.ne.s32.totalorder %s2300_s15, %s1940_s2  ;;  %p1944_p8 = scmp.lt.u32.totalorder %s1940_s2, %s2300_s15 }
 0x463   :  { %p1946_p9 = pnand %p1944_p8, %p1941_p7 }
 0x465   :  { %1949 = shalt.err (!%p1946_p9)
}
 0x466   :  { %1024 = dma.vmem_to_hbm [thread:$0]  %s1019_s26, 256, %s2300_s15, [#allocation4], %s1991_s28, %s1991_s28, %s1992_s20  }
 0x467   :  { %s2312_s6 = sld [smem:[#allocation29_spill]]  ;;  %s2001_s15 = smov [#allocation19]  }
 0x468   :  { %s1042_s7 = sshll.u32 %s2001_s15, 4  ;;  %s1043_s7 = int_to_ptr.vmem [resolvable:$true] %s1042_s7 }
 0x469   :  { %s1950_s10 = scalar_lea.vmem %s1043_s7, 256  ;;  %p1955_p11 = scmp.lt.s32.totalorder %s1043_s7, %s1043_s7 }
 0x46a   :  { %p1951_p10 = scmp.ne.s32.totalorder %s1043_s7, %s1950_s10  ;;  %p1956_p12 = scmp.lt.s32.totalorder %s1950_s10, %s1950_s10 }
 0x46c   :  { %p1957_p13 = por %p1956_p12, %p1955_p11 }
 0x46d   :  { %v1070_v31 = vld [vmem:[%s2312_s6] ss:$0 sm:$0xff] }
 0x46e   :  { %p1958_p0 = pnand %p1957_p13, %p1951_p10 }
 0x522   :  { %v1441_v32 = vpop.f32.mrb[6].mxu1 }
 0x523   :  { %v996_v33 = vadd.f32 %v1441_v32, %v1070_v31  ;;  %v990_v34 = vpop.f32.mrb[7].mxu1 }
 0x524   :  { %v991_v35 = vadd.f32 %v1070_v31, %v990_v34 }
 0x525   :  { %v1000_v36 = vsub.f32 0.0, %v996_v33 }
 0x526   :  { %v999_v37 = vsub.f32 0.0, %v991_v35 }
 0x527   :  { %v1003_v38 = vmul.f32 1.442695, %v1000_v36 }
 0x528   :  { %v1001_v39 = vmul.f32 1.442695, %v999_v37 }
 0x529   :  { %1722 = vpow2.f32 %v1003_v38 }
 0x52a   :  { %1724 = vpow2.f32 %v1001_v39 }
 0x533   :  { %v1723_v40 = vpop.eup %1722 }
 0x534   :  { %v1725_v41 = vpop.eup %1724  ;;  %v1006_v42 = vadd.f32 1.0, %v1723_v40 }
 0x535   :  { %v1005_v43 = vadd.f32 1.0, %v1725_v41 }
 0x536   :  { %1726 = vrcp.f32 %v1006_v42 }
 0x537   :  { %1728 = vrcp.f32 %v1005_v43 }
 0x540   :  { %v1727_v44 = vpop.eup %1726 }
 0x541   :  { %v1729_v45 = vpop.eup %1728  ;;  %1012 = vst [vmem:[#allocation19 + $0x8] sm:$0xff] %v1727_v44 }
 0x542   :  { %1011 = vst [vmem:[#allocation19] sm:$0xff] %v1729_v45 }
 0x543   :  { %1961 = shalt.err (!%p1958_p0)
}
 0x544   :  { %s2313_s26 = sld [smem:[#allocation30_spill]] }
 0x54a   :  { %s1962_s19 = scalar_lea.hbm %s2313_s26, 256 }
 0x54b   :  { %p1963_p1 = scmp.ne.s32.totalorder %s2313_s26, %s1962_s19  ;;  %p1966_p2 = scmp.lt.u32.totalorder %s1962_s19, %s2313_s26 }
 0x54d   :  { %p1968_p3 = pnand %p1966_p2, %p1963_p1 }
 0x54f   :  { %1971 = shalt.err (!%p1968_p3)
}
 0x550   :  { %1048 = dma.vmem_to_hbm [thread:$0]  %s1043_s7, 256, %s2313_s26, [#allocation18], %s1991_s28, %s1991_s28, %s1992_s20  }
 0x551   :  { %1982 = dma.done.wait [#allocation4], 256  }
 0x552   :  { %1983 = vsyncadd [#allocation4], 4294967040 }
 0x553   :  { %1984 = dma.done.wait [#allocation18], 512  }
 0x554   :  { %1985 = vsyncadd [#allocation18], 4294966784 }
 0x555   :  { %1058 = vsyncpa [#allocation3], 1 }
 0x556   :  { %1059 = vsyncpa [#allocation6], 1 }
 0x557   :  { %1060 = vsyncpa [#allocation9], 1 }
 0x558   :  { %1061 = vsyncpa [#allocation12], 1 }
 0x559   :  { %1062 = vsyncpa [#allocation15], 1 }
 0x55a   :  { %1063 = vsyncpa [#allocation4], 1 }
 0x55b   :  { %1064 = vsyncpa [#allocation18], 1 }

</bundles_post_ra>
